<compile_context>
chip_gen: v7x
topology: tpu7x:2x2x1
jax: 0.10.0
libtpu: 0.0.40
codegen_flags: <defaults>
</compile_context>

<pallas_src>
import math
import functools

import jax
import jax.numpy as jnp
from jax.experimental import pallas as pl
from jax.experimental.pallas import tpu as pltpu


# ------------------------------ kernels ------------------------------------


def _feat_kernel(x_ref, w_ref, out_ref):
    """support = x @ W for one row block (bf16 inputs, f32 accumulation)."""
    out_ref[...] = jnp.dot(
        x_ref[...], w_ref[...], preferred_element_type=jnp.float32
    ).astype(out_ref.dtype)


def _spmm_relu_feat_kernel(adj_ref, s1_ref, b1_ref, w2_ref, out_ref, acc_ref):
    """Layer 1 spmm + bias + relu, fused with layer-2 feature transform:
       out = relu(adj @ support1 + b1) @ W2, reduced over adj column blocks."""
    k = pl.program_id(1)

    @pl.when(k == 0)
    def _():
        acc_ref[...] = jnp.zeros_like(acc_ref)

    acc_ref[...] += jnp.dot(
        adj_ref[...], s1_ref[...], preferred_element_type=jnp.float32
    )

    @pl.when(k == pl.num_programs(1) - 1)
    def _():
        hid = jnp.maximum(acc_ref[...] + b1_ref[...], 0.0)
        # dropout(training=False) == identity
        out_ref[...] = jnp.dot(
            hid.astype(jnp.bfloat16), w2_ref[...],
            preferred_element_type=jnp.float32,
        ).astype(out_ref.dtype)


def _spmm_logsoftmax_kernel(adj_ref, s2_ref, b2_ref, out_ref, acc_ref):
    """Layer 2 spmm + bias + log_softmax (class axis), reduced over adj
       column blocks. Padded class columns carry -1e30 bias -> exp() == 0."""
    k = pl.program_id(1)

    @pl.when(k == 0)
    def _():
        acc_ref[...] = jnp.zeros_like(acc_ref)

    acc_ref[...] += jnp.dot(
        adj_ref[...], s2_ref[...], preferred_element_type=jnp.float32
    )

    @pl.when(k == pl.num_programs(1) - 1)
    def _():
        logits = acc_ref[...] + b2_ref[...]
        m = jnp.max(logits, axis=-1, keepdims=True)
        shifted = logits - m
        lse = jnp.log(jnp.sum(jnp.exp(shifted), axis=-1, keepdims=True))
        out_ref[...] = (shifted - lse).astype(out_ref.dtype)


# ------------------------------ wrapper -------------------------------------


def _round_up(n, m):
    return ((n + m - 1) // m) * m


@functools.partial(jax.jit, static_argnames=("tile_m", "tile_k"))
def gcn_forward(x, adj, w1, b1, w2, b2, *, tile_m=256, tile_k=256):
    n, f = x.shape
    h = w1.shape[1]
    c = w2.shape[1]

    n_pad = _round_up(n, max(tile_m, tile_k))
    f_pad = _round_up(f, 128)
    h_pad = _round_up(h, 128)
    c_pad = _round_up(c, 128)

    gi = n_pad // tile_m          # row blocks   ("parallel")
    gk = n_pad // tile_k          # adj reduction blocks ("arbitrary", last)

    # --- pad + cast operands (zeros are neutral for matmul / relu) ---------
    xp = jnp.zeros((n_pad, f_pad), jnp.bfloat16).at[:n, :f].set(
        x.astype(jnp.bfloat16))
    adjp = jnp.zeros((n_pad, n_pad), jnp.bfloat16).at[:n, :n].set(
        adj.astype(jnp.bfloat16))
    w1p = jnp.zeros((f_pad, h_pad), jnp.bfloat16).at[:f, :h].set(
        w1.astype(jnp.bfloat16))
    b1p = jnp.zeros((1, h_pad), jnp.float32).at[:, :h].set(
        b1.reshape(1, h).astype(jnp.float32))
    w2p = jnp.zeros((h_pad, c_pad), jnp.bfloat16).at[:h, :c].set(
        w2.astype(jnp.bfloat16))
    # padded class columns get a very negative bias so log_softmax ignores them
    b2p = jnp.full((1, c_pad), -1e30, jnp.float32).at[:, :c].set(
        b2.reshape(1, c).astype(jnp.float32))

    # Explicit scoped-VMEM budget with headroom (tiles here are tiny; this
    # stays well under v7x's 64 MiB physical VMEM and above v5e's 16 MiB default).
    vmem_limit = 48 * 1024 * 1024

    # --- stage 1: support1 = x @ W1 (row-tiled, hoisted out of reduction) ---
    support1 = pl.pallas_call(
        _feat_kernel,
        out_shape=jax.ShapeDtypeStruct((n_pad, h_pad), jnp.bfloat16),
        grid=(gi,),
        in_specs=[
            pl.BlockSpec((tile_m, f_pad), lambda i: (i, 0)),
            pl.BlockSpec((f_pad, h_pad), lambda i: (0, 0)),
        ],
        out_specs=pl.BlockSpec((tile_m, h_pad), lambda i: (i, 0)),
        compiler_params=pltpu.CompilerParams(
            dimension_semantics=("parallel",),
            vmem_limit_bytes=vmem_limit,
        ),
    )(xp, w1p)

    # --- stage 2: support2 = relu(adj @ support1 + b1) @ W2 -----------------
    support2 = pl.pallas_call(
        _spmm_relu_feat_kernel,
        out_shape=jax.ShapeDtypeStruct((n_pad, c_pad), jnp.bfloat16),
        grid=(gi, gk),
        in_specs=[
            pl.BlockSpec((tile_m, tile_k), lambda i, k: (i, k)),   # adj
            pl.BlockSpec((tile_k, h_pad), lambda i, k: (k, 0)),    # support1
            pl.BlockSpec((1, h_pad), lambda i, k: (0, 0)),         # b1
            pl.BlockSpec((h_pad, c_pad), lambda i, k: (0, 0)),     # W2
        ],
        out_specs=pl.BlockSpec((tile_m, c_pad), lambda i, k: (i, 0)),
        scratch_shapes=[pltpu.VMEM((tile_m, h_pad), jnp.float32)],
        compiler_params=pltpu.CompilerParams(
            dimension_semantics=("parallel", "arbitrary"),
            vmem_limit_bytes=vmem_limit,
        ),
    )(adjp, support1, b1p, w2p)

    # --- stage 3: out = log_softmax(adj @ support2 + b2) --------------------
    out_pad = pl.pallas_call(
        _spmm_logsoftmax_kernel,
        out_shape=jax.ShapeDtypeStruct((n_pad, c_pad), jnp.float32),
        grid=(gi, gk),
        in_specs=[
            pl.BlockSpec((tile_m, tile_k), lambda i, k: (i, k)),   # adj
            pl.BlockSpec((tile_k, c_pad), lambda i, k: (k, 0)),    # support2
            pl.BlockSpec((1, c_pad), lambda i, k: (0, 0)),         # b2
        ],
        out_specs=pl.BlockSpec((tile_m, c_pad), lambda i, k: (i, 0)),
        scratch_shapes=[pltpu.VMEM((tile_m, c_pad), jnp.float32)],
        compiler_params=pltpu.CompilerParams(
            dimension_semantics=("parallel", "arbitrary"),
            vmem_limit_bytes=vmem_limit,
        ),
    )(adjp, support2, b2p)

    return out_pad[:n, :c]


# ------------------------------ reference & init ----------------------------


def gcn_reference(x, adj, w1, b1, w2, b2):
    hid = jax.nn.relu(adj @ (x @ w1) + b1)
    logits = adj @ (hid @ w2) + b2
    return jax.nn.log_softmax(logits, axis=-1)


def init_gcn_params(key, n_features, n_hidden, n_class):
    """Matches GCNLayer.reset_parameters: uniform(-1/sqrt(out), 1/sqrt(out))."""
    k1, k2, k3, k4 = jax.random.split(key, 4)
    std1 = 1.0 / math.sqrt(n_hidden)
    std2 = 1.0 / math.sqrt(n_class)
    w1 = jax.random.uniform(k1, (n_features, n_hidden), jnp.float32, -std1, std1)
    b1 = jax.random.uniform(k2, (1, n_hidden), jnp.float32, -std1, std1)
    w2 = jax.random.uniform(k3, (n_hidden, n_class), jnp.float32, -std2, std2)
    b2 = jax.random.uniform(k4, (1, n_class), jnp.float32, -std2, std2)
    return w1, b1, w2, b2


if __name__ == "__main__":
    # Small synthetic graph: 8 nodes, 32 input features, 16 hidden, 8 classes.
    n_nodes, n_features, n_hidden, n_class = 8, 32, 16, 8
    dropout = 0.5  # unused in eval-mode forward

    key = jax.random.PRNGKey(0)
    kx, kadj, kparams = jax.random.split(key, 3)

    x = jax.random.normal(kx, (n_nodes, n_features), jnp.float32)

    # Symmetric normalized adjacency with self-loops: D^-1/2 (A + I) D^-1/2
    a = (jax.random.uniform(kadj, (n_nodes, n_nodes)) > 0.6).astype(jnp.float32)
    a = jnp.maximum(a, a.T)
    a = a + jnp.eye(n_nodes, dtype=jnp.float32)
    deg = jnp.sum(a, axis=1)
    d_inv_sqrt = 1.0 / jnp.sqrt(deg)
    adj = a * d_inv_sqrt[:, None] * d_inv_sqrt[None, :]

    w1, b1, w2, b2 = init_gcn_params(kparams, n_features, n_hidden, n_class)

    out = gcn_forward(x, adj, w1, b1, w2, b2)
    jax.block_until_ready(out)

    assert out.shape == (n_nodes, n_class)

    # each row of exp(log_softmax) should sum to ~1
    row_sums = jnp.sum(jnp.exp(out), axis=1)
    assert bool(jnp.all(jnp.abs(row_sums - 1.0) < 1e-4))

    # compare against f32 pure-JAX reference (loose tol: kernel uses bf16 matmuls)
    ref = gcn_reference(x, adj, w1, b1, w2, b2)
    max_err = float(jnp.max(jnp.abs(out - ref)))
    assert max_err < 1e-1, f"max abs diff vs reference too large: {max_err}"

    print("KERNEL_OK")
</pallas_src>

<mosaic_0001>
module attributes {stable_mosaic.version = 11 : i64} {
  func.func @_feat_kernel(%arg0: i32, %arg1: memref<256x128xbf16, #tpu.memory_space<vmem>>, %arg2: memref<128x128xbf16, #tpu.memory_space<vmem>>, %arg3: memref<256x128xbf16, #tpu.memory_space<vmem>>) attributes {dimension_semantics = [#tpu.dimension_semantics<parallel>], iteration_bounds = array<i64: 1>, scalar_prefetch = 0 : i64, scratch_operands = 0 : i64, tpu.core_type = #tpu.core_type<tc>, window_params = [{transform_indices = @transform_0, window_bounds = array<i64: 256, 128>}, {pipeline_mode = #tpu.pipeline_mode<synchronous>, transform_indices = @transform_1, window_bounds = array<i64: 128, 128>}, {transform_indices = @transform_2, window_bounds = array<i64: 256, 128>}]} {
    %c0 = arith.constant 0 : index
    %c0_0 = arith.constant 0 : index
    %0 = vector.load %arg1[%c0, %c0_0] : memref<256x128xbf16, #tpu.memory_space<vmem>>, vector<256x128xbf16>
    %c0_1 = arith.constant 0 : index
    %c0_2 = arith.constant 0 : index
    %1 = vector.load %arg2[%c0_1, %c0_2] : memref<128x128xbf16, #tpu.memory_space<vmem>>, vector<128x128xbf16>
    %cst = arith.constant dense<0.000000e+00> : vector<256x128xf32>
    %2 = tpu.matmul %0, %1, %cst {dimension_numbers = #tpu.dot_dimension_numbers<[1], [0], [0], [1], [0, 0, 1, 1], [], []>} : vector<256x128xbf16>, vector<128x128xbf16>, vector<256x128xf32> -> vector<256x128xf32>
    %3 = arith.truncf %2 : vector<256x128xf32> to vector<256x128xbf16>
    %c0_3 = arith.constant 0 : index
    %c0_4 = arith.constant 0 : index
    %4 = vector.load %arg3[%c0_3, %c0_4] : memref<256x128xbf16, #tpu.memory_space<vmem>>, vector<256x128xbf16>
    tpu.vector_store %arg3[%c0_3, %c0_4], %3 {strides = array<i32>} : memref<256x128xbf16, #tpu.memory_space<vmem>>, vector<256x128xbf16>,
    return
  }
  func.func @transform_0(%arg0: i32) -> (i32, i32) {
    %c0_i32 = arith.constant 0 : i32
    %c0_i32_0 = arith.constant 0 : i32
    return %arg0, %c0_i32 : i32, i32
  }
  func.func @transform_1(%arg0: i32) -> (i32, i32) {
    %c0_i32 = arith.constant 0 : i32
    %c0_i32_0 = arith.constant 0 : i32
    %c0_i32_1 = arith.constant 0 : i32
    return %c0_i32, %c0_i32_0 : i32, i32
  }
  func.func @transform_2(%arg0: i32) -> (i32, i32) {
    %c0_i32 = arith.constant 0 : i32
    %c0_i32_0 = arith.constant 0 : i32
    return %arg0, %c0_i32 : i32, i32
  }
}

module attributes {stable_mosaic.version = 11 : i64} {
  func.func @_spmm_relu_feat_kernel(%arg0: i32, %arg1: i32, %arg2: memref<256x256xbf16, #tpu.memory_space<vmem>>, %arg3: memref<256x128xbf16, #tpu.memory_space<vmem>>, %arg4: memref<1x128xf32, #tpu.memory_space<vmem>>, %arg5: memref<128x128xbf16, #tpu.memory_space<vmem>>, %arg6: memref<256x128xbf16, #tpu.memory_space<vmem>>, %arg7: memref<256x128xf32, #tpu.memory_space<vmem>>) attributes {dimension_semantics = [#tpu.dimension_semantics<parallel>, #tpu.dimension_semantics<arbitrary>], iteration_bounds = array<i64: 1, 1>, scalar_prefetch = 0 : i64, scratch_operands = 1 : i64, tpu.core_type = #tpu.core_type<tc>, window_params = [{transform_indices = @transform_0, window_bounds = array<i64: 256, 256>}, {transform_indices = @transform_1, window_bounds = array<i64: 256, 128>}, {pipeline_mode = #tpu.pipeline_mode<synchronous>, transform_indices = @transform_2, window_bounds = array<i64: 1, 128>}, {pipeline_mode = #tpu.pipeline_mode<synchronous>, transform_indices = @transform_3, window_bounds = array<i64: 128, 128>}, {transform_indices = @transform_4, window_bounds = array<i64: 256, 128>}]} {
    %c0_i32 = arith.constant 0 : i32
    %0 = arith.cmpi eq, %arg1, %c0_i32 : i32
    %1 = arith.extui %0 : i1 to i32
    %c0_i32_0 = arith.constant 0 : i32
    %2 = arith.cmpi ne, %1, %c0_i32_0 : i32
    scf.if %2 {
      %cst_10 = arith.constant 0.000000e+00 : f32
      %12 = vector.broadcast %cst_10 : f32 to vector<256x128xf32>
      %c0_11 = arith.constant 0 : index
      %c0_12 = arith.constant 0 : index
      %13 = vector.load %arg7[%c0_11, %c0_12] : memref<256x128xf32, #tpu.memory_space<vmem>>, vector<256x128xf32>
      tpu.vector_store %arg7[%c0_11, %c0_12], %12 {strides = array<i32>} : memref<256x128xf32, #tpu.memory_space<vmem>>, vector<256x128xf32>,
    } else {
    }
    %c0 = arith.constant 0 : index
    %c0_1 = arith.constant 0 : index
    %3 = vector.load %arg7[%c0, %c0_1] : memref<256x128xf32, #tpu.memory_space<vmem>>, vector<256x128xf32>
    %c0_2 = arith.constant 0 : index
    %c0_3 = arith.constant 0 : index
    %4 = vector.load %arg2[%c0_2, %c0_3] : memref<256x256xbf16, #tpu.memory_space<vmem>>, vector<256x256xbf16>
    %c0_4 = arith.constant 0 : index
    %c0_5 = arith.constant 0 : index
    %5 = vector.load %arg3[%c0_4, %c0_5] : memref<256x128xbf16, #tpu.memory_space<vmem>>, vector<256x128xbf16>
    %cst = arith.constant dense<0.000000e+00> : vector<256x128xf32>
    %6 = tpu.matmul %4, %5, %cst {dimension_numbers = #tpu.dot_dimension_numbers<[1], [0], [0], [1], [0, 0, 1, 1], [], []>} : vector<256x256xbf16>, vector<256x128xbf16>, vector<256x128xf32> -> vector<256x128xf32>
    %7 = arith.addf %3, %6 : vector<256x128xf32>
    %c0_6 = arith.constant 0 : index
    %c0_7 = arith.constant 0 : index
    %8 = vector.load %arg7[%c0_6, %c0_7] : memref<256x128xf32, #tpu.memory_space<vmem>>, vector<256x128xf32>
    tpu.vector_store %arg7[%c0_6, %c0_7], %7 {strides = array<i32>} : memref<256x128xf32, #tpu.memory_space<vmem>>, vector<256x128xf32>,
    %c0_i32_8 = arith.constant 0 : i32
    %9 = arith.cmpi eq, %arg1, %c0_i32_8 : i32
    %10 = arith.extui %9 : i1 to i32
    %c0_i32_9 = arith.constant 0 : i32
    %11 = arith.cmpi ne, %10, %c0_i32_9 : i32
    scf.if %11 {
      %c0_10 = arith.constant 0 : index
      %c0_11 = arith.constant 0 : index
      %12 = vector.load %arg7[%c0_10, %c0_11] : memref<256x128xf32, #tpu.memory_space<vmem>>, vector<256x128xf32>
      %c0_12 = arith.constant 0 : index
      %c0_13 = arith.constant 0 : index
      %13 = vector.load %arg4[%c0_12, %c0_13] : memref<1x128xf32, #tpu.memory_space<vmem>>, vector<1x128xf32>
      %14 = vector.broadcast %13 : vector<1x128xf32> to vector<256x128xf32>
      %15 = arith.addf %12, %14 : vector<256x128xf32>
      %cst_14 = arith.constant 0.000000e+00 : f32
      %16 = vector.broadcast %cst_14 : f32 to vector<256x128xf32>
      %17 = arith.maximumf %15, %16 : vector<256x128xf32>
      %18 = arith.truncf %17 : vector<256x128xf32> to vector<256x128xbf16>
      %c0_15 = arith.constant 0 : index
      %c0_16 = arith.constant 0 : index
      %19 = vector.load %arg5[%c0_15, %c0_16] : memref<128x128xbf16, #tpu.memory_space<vmem>>, vector<128x128xbf16>
      %cst_17 = arith.constant dense<0.000000e+00> : vector<256x128xf32>
      %20 = tpu.matmul %18, %19, %cst_17 {dimension_numbers = #tpu.dot_dimension_numbers<[1], [0], [0], [1], [0, 0, 1, 1], [], []>} : vector<256x128xbf16>, vector<128x128xbf16>, vector<256x128xf32> -> vector<256x128xf32>
      %21 = arith.truncf %20 : vector<256x128xf32> to vector<256x128xbf16>
      %c0_18 = arith.constant 0 : index
      %c0_19 = arith.constant 0 : index
      %22 = vector.load %arg6[%c0_18, %c0_19] : memref<256x128xbf16, #tpu.memory_space<vmem>>, vector<256x128xbf16>
      tpu.vector_store %arg6[%c0_18, %c0_19], %21 {strides = array<i32>} : memref<256x128xbf16, #tpu.memory_space<vmem>>, vector<256x128xbf16>,
    } else {
    }
    return
  }
  func.func @transform_0(%arg0: i32, %arg1: i32) -> (i32, i32) {
    %c0_i32 = arith.constant 0 : i32
    return %arg0, %arg1 : i32, i32
  }
  func.func @transform_1(%arg0: i32, %arg1: i32) -> (i32, i32) {
    %c0_i32 = arith.constant 0 : i32
    %c0_i32_0 = arith.constant 0 : i32
    return %arg1, %c0_i32 : i32, i32
  }
  func.func @transform_2(%arg0: i32, %arg1: i32) -> (i32, i32) {
    %c0_i32 = arith.constant 0 : i32
    %c0_i32_0 = arith.constant 0 : i32
    %c0_i32_1 = arith.constant 0 : i32
    return %c0_i32, %c0_i32_0 : i32, i32
  }
  func.func @transform_3(%arg0: i32, %arg1: i32) -> (i32, i32) {
    %c0_i32 = arith.constant 0 : i32
    %c0_i32_0 = arith.constant 0 : i32
    %c0_i32_1 = arith.constant 0 : i32
    return %c0_i32, %c0_i32_0 : i32, i32
  }
  func.func @transform_4(%arg0: i32, %arg1: i32) -> (i32, i32) {
    %c0_i32 = arith.constant 0 : i32
    %c0_i32_0 = arith.constant 0 : i32
    return %arg0, %c0_i32 : i32, i32
  }
}

module attributes {stable_mosaic.version = 11 : i64} {
  func.func @_spmm_logsoftmax_kernel(%arg0: i32, %arg1: i32, %arg2: memref<256x256xbf16, #tpu.memory_space<vmem>>, %arg3: memref<256x128xbf16, #tpu.memory_space<vmem>>, %arg4: memref<1x128xf32, #tpu.memory_space<vmem>>, %arg5: memref<256x128xf32, #tpu.memory_space<vmem>>, %arg6: memref<256x128xf32, #tpu.memory_space<vmem>>) attributes {dimension_semantics = [#tpu.dimension_semantics<parallel>, #tpu.dimension_semantics<arbitrary>], iteration_bounds = array<i64: 1, 1>, scalar_prefetch = 0 : i64, scratch_operands = 1 : i64, tpu.core_type = #tpu.core_type<tc>, window_params = [{transform_indices = @transform_0, window_bounds = array<i64: 256, 256>}, {transform_indices = @transform_1, window_bounds = array<i64: 256, 128>}, {pipeline_mode = #tpu.pipeline_mode<synchronous>, transform_indices = @transform_2, window_bounds = array<i64: 1, 128>}, {transform_indices = @transform_3, window_bounds = array<i64: 256, 128>}]} {
    %c0_i32 = arith.constant 0 : i32
    %0 = arith.cmpi eq, %arg1, %c0_i32 : i32
    %1 = arith.extui %0 : i1 to i32
    %c0_i32_0 = arith.constant 0 : i32
    %2 = arith.cmpi ne, %1, %c0_i32_0 : i32
    scf.if %2 {
      %cst_10 = arith.constant 0.000000e+00 : f32
      %12 = vector.broadcast %cst_10 : f32 to vector<256x128xf32>
      %c0_11 = arith.constant 0 : index
      %c0_12 = arith.constant 0 : index
      %13 = vector.load %arg6[%c0_11, %c0_12] : memref<256x128xf32, #tpu.memory_space<vmem>>, vector<256x128xf32>
      tpu.vector_store %arg6[%c0_11, %c0_12], %12 {strides = array<i32>} : memref<256x128xf32, #tpu.memory_space<vmem>>, vector<256x128xf32>,
    } else {
    }
    %c0 = arith.constant 0 : index
    %c0_1 = arith.constant 0 : index
    %3 = vector.load %arg6[%c0, %c0_1] : memref<256x128xf32, #tpu.memory_space<vmem>>, vector<256x128xf32>
    %c0_2 = arith.constant 0 : index
    %c0_3 = arith.constant 0 : index
    %4 = vector.load %arg2[%c0_2, %c0_3] : memref<256x256xbf16, #tpu.memory_space<vmem>>, vector<256x256xbf16>
    %c0_4 = arith.constant 0 : index
    %c0_5 = arith.constant 0 : index
    %5 = vector.load %arg3[%c0_4, %c0_5] : memref<256x128xbf16, #tpu.memory_space<vmem>>, vector<256x128xbf16>
    %cst = arith.constant dense<0.000000e+00> : vector<256x128xf32>
    %6 = tpu.matmul %4, %5, %cst {dimension_numbers = #tpu.dot_dimension_numbers<[1], [0], [0], [1], [0, 0, 1, 1], [], []>} : vector<256x256xbf16>, vector<256x128xbf16>, vector<256x128xf32> -> vector<256x128xf32>
    %7 = arith.addf %3, %6 : vector<256x128xf32>
    %c0_6 = arith.constant 0 : index
    %c0_7 = arith.constant 0 : index
    %8 = vector.load %arg6[%c0_6, %c0_7] : memref<256x128xf32, #tpu.memory_space<vmem>>, vector<256x128xf32>
    tpu.vector_store %arg6[%c0_6, %c0_7], %7 {strides = array<i32>} : memref<256x128xf32, #tpu.memory_space<vmem>>, vector<256x128xf32>,
    %c0_i32_8 = arith.constant 0 : i32
    %9 = arith.cmpi eq, %arg1, %c0_i32_8 : i32
    %10 = arith.extui %9 : i1 to i32
    %c0_i32_9 = arith.constant 0 : i32
    %11 = arith.cmpi ne, %10, %c0_i32_9 : i32
    scf.if %11 {
      %c0_10 = arith.constant 0 : index
      %c0_11 = arith.constant 0 : index
      %12 = vector.load %arg6[%c0_10, %c0_11] : memref<256x128xf32, #tpu.memory_space<vmem>>, vector<256x128xf32>
      %c0_12 = arith.constant 0 : index
      %c0_13 = arith.constant 0 : index
      %13 = vector.load %arg4[%c0_12, %c0_13] : memref<1x128xf32, #tpu.memory_space<vmem>>, vector<1x128xf32>
      %14 = vector.broadcast %13 : vector<1x128xf32> to vector<256x128xf32>
      %15 = arith.addf %12, %14 : vector<256x128xf32>
      %cst_14 = arith.constant dense<0xFF800000> : vector<256xf32>
      %16 = vector.multi_reduction <maximumf>, %15, %cst_14 [1] : vector<256x128xf32> to vector<256xf32>
      %17 = vector.shape_cast %16 : vector<256xf32> to vector<256x1xf32>
      %18 = vector.broadcast %17 : vector<256x1xf32> to vector<256x128xf32>
      %19 = arith.subf %15, %18 : vector<256x128xf32>
      %20 = math.exp %19 : vector<256x128xf32>
      %cst_15 = arith.constant dense<0.000000e+00> : vector<256xf32>
      %21 = vector.multi_reduction <add>, %20, %cst_15 [1] : vector<256x128xf32> to vector<256xf32>
      %22 = vector.shape_cast %21 : vector<256xf32> to vector<256x1xf32>
      %23 = math.log %22 : vector<256x1xf32>
      %24 = vector.broadcast %23 : vector<256x1xf32> to vector<256x128xf32>
      %25 = arith.subf %19, %24 : vector<256x128xf32>
      %c0_16 = arith.constant 0 : index
      %c0_17 = arith.constant 0 : index
      %26 = vector.load %arg5[%c0_16, %c0_17] : memref<256x128xf32, #tpu.memory_space<vmem>>, vector<256x128xf32>
      tpu.vector_store %arg5[%c0_16, %c0_17], %25 {strides = array<i32>} : memref<256x128xf32, #tpu.memory_space<vmem>>, vector<256x128xf32>,
    } else {
    }
    return
  }
  func.func @transform_0(%arg0: i32, %arg1: i32) -> (i32, i32) {
    %c0_i32 = arith.constant 0 : i32
    return %arg0, %arg1 : i32, i32
  }
  func.func @transform_1(%arg0: i32, %arg1: i32) -> (i32, i32) {
    %c0_i32 = arith.constant 0 : i32
    %c0_i32_0 = arith.constant 0 : i32
    return %arg1, %c0_i32 : i32, i32
  }
  func.func @transform_2(%arg0: i32, %arg1: i32) -> (i32, i32) {
    %c0_i32 = arith.constant 0 : i32
    %c0_i32_0 = arith.constant 0 : i32
    %c0_i32_1 = arith.constant 0 : i32
    return %c0_i32, %c0_i32_0 : i32, i32
  }
  func.func @transform_3(%arg0: i32, %arg1: i32) -> (i32, i32) {
    %c0_i32 = arith.constant 0 : i32
    %c0_i32_0 = arith.constant 0 : i32
    return %arg0, %c0_i32 : i32, i32
  }
}

</mosaic_0001>

<bundles_post_ra>
// kernel: gcn_forward.3
= control target key start
LH: loop header
LB: loop body
LE: loop exit
PB: predicated region body
PF: predicated region fallthrough
CT: control target
= control target key end

     0   :  { %s959_s1 = inlined_call_operand.vmem [shape: bf16[128,128], index: 1, kind: input, shape index: {}]   ;;  %s960_s0 = inlined_call_operand.vmem [shape: bf16[256,128], index: 0, kind: input, shape index: {}]   ;;  %s961_s2 = inlined_call_operand.vmem [shape: bf16[256,128], index: 2, kind: output, shape index: {}]  }
   0x1   :  { %v800_v0 = vld [vmem:[%s959_s1] sm:$0xff]   ;;  %v801_v1 = vld [vmem:[%s959_s1 + $0x8] sm:$0xff]   ;;  %v802_v2 = vld [vmem:[%s959_s1 + $0x10] sm:$0xff]  }
   0x2   :  { %736 = vmatprep.subr.bf16.mxu0 %v800_v0  ;;  %784 = vmatprep.subr.bf16.mxu1 %v800_v0  ;;  %v803_v3 = vld [vmem:[%s959_s1 + $0x18] sm:$0xff]   ;;  %v808_v4 = vld [vmem:[%s960_s0] sm:$0xff]   ;;  %v805_v7 = vld [vmem:[%s959_s1 + $0x28] sm:$0xff]  }
   0x3   :  { %737 = vmatpush3.bf16.msra.mxu0 %v800_v0  ;;  %792 = vmatpush3.bf16.msra.mxu1 %v800_v0  ;;  %v809_v5 = vld [vmem:[%s960_s0 + $0x40] sm:$0xff]   ;;  %v806_v8 = vld [vmem:[%s959_s1 + $0x30] sm:$0xff]   ;;  %v807_v9 = vld [vmem:[%s959_s1 + $0x38] sm:$0xff]  }
   0x4   :  { %738 = vmatprep.subr.bf16.mxu0 %v801_v1  ;;  %785 = vmatprep.subr.bf16.mxu1 %v801_v1  ;;  %v804_v6 = vld [vmem:[%s959_s1 + $0x20] sm:$0xff]   ;;  %v810_v10 = vld [vmem:[%s960_s0 + $0x8] sm:$0xff]   ;;  %v812_v12 = vld [vmem:[%s960_s0 + $0x10] sm:$0xff]  }
   0x5   :  { %752 = vmatprep.mubr.bf16.mxu0 %v808_v4  ;;  %768 = vmatprep.mubr.bf16.mxu1 %v809_v5  ;;  %v811_v11 = vld [vmem:[%s960_s0 + $0x48] sm:$0xff]   ;;  %v813_v13 = vld [vmem:[%s960_s0 + $0x50] sm:$0xff]   ;;  %v814_v14 = vld [vmem:[%s960_s0 + $0x18] sm:$0xff]  }
   0x6   :  { %v815_v15 = vld [vmem:[%s960_s0 + $0x58] sm:$0xff]   ;;  %v816_v16 = vld [vmem:[%s960_s0 + $0x20] sm:$0xff]   ;;  %v818_v18 = vld [vmem:[%s960_s0 + $0x28] sm:$0xff]  }
   0x7   :  { %739 = vmatpush3.bf16.msra.mxu0 %v801_v1  ;;  %793 = vmatpush3.bf16.msra.mxu1 %v801_v1  ;;  %v817_v17 = vld [vmem:[%s960_s0 + $0x60] sm:$0xff]   ;;  %v819_v19 = vld [vmem:[%s960_s0 + $0x68] sm:$0xff]   ;;  %v820_v20 = vld [vmem:[%s960_s0 + $0x30] sm:$0xff]  }
   0x8   :  { %740 = vmatprep.subr.bf16.mxu0 %v802_v2  ;;  %786 = vmatprep.subr.bf16.mxu1 %v802_v2  ;;  %v821_v21 = vld [vmem:[%s960_s0 + $0x70] sm:$0xff]   ;;  %v822_v22 = vld [vmem:[%s960_s0 + $0x38] sm:$0xff]  }
   0x9   :  { %v823_v23 = vld [vmem:[%s960_s0 + $0x78] sm:$0xff]  }
   0xb   :  { %741 = vmatpush3.bf16.msra.mxu0 %v802_v2  ;;  %794 = vmatpush3.bf16.msra.mxu1 %v802_v2 }
   0xc   :  { %742 = vmatprep.subr.bf16.mxu0 %v803_v3  ;;  %787 = vmatprep.subr.bf16.mxu1 %v803_v3 }
   0xf   :  { %743 = vmatpush3.bf16.msra.mxu0 %v803_v3  ;;  %795 = vmatpush3.bf16.msra.mxu1 %v803_v3 }
  0x10   :  { %744 = vmatprep.subr.bf16.mxu0 %v804_v6  ;;  %788 = vmatprep.subr.bf16.mxu1 %v804_v6 }
  0x13   :  { %745 = vmatpush3.bf16.msra.mxu0 %v804_v6  ;;  %796 = vmatpush3.bf16.msra.mxu1 %v804_v6 }
  0x14   :  { %746 = vmatprep.subr.bf16.mxu0 %v805_v7  ;;  %789 = vmatprep.subr.bf16.mxu1 %v805_v7 }
  0x17   :  { %747 = vmatpush3.bf16.msra.mxu0 %v805_v7  ;;  %797 = vmatpush3.bf16.msra.mxu1 %v805_v7 }
  0x18   :  { %748 = vmatprep.subr.bf16.mxu0 %v806_v8  ;;  %790 = vmatprep.subr.bf16.mxu1 %v806_v8 }
  0x1b   :  { %749 = vmatpush3.bf16.msra.mxu0 %v806_v8  ;;  %798 = vmatpush3.bf16.msra.mxu1 %v806_v8 }
  0x1c   :  { %750 = vmatprep.subr.bf16.mxu0 %v807_v9  ;;  %791 = vmatprep.subr.bf16.mxu1 %v807_v9 }
  0x1f   :  { %751 = vmatpush3.bf16.msra.mxu0 %v807_v9  ;;  %799 = vmatpush3.bf16.msra.mxu1 %v807_v9 }
  0x22   :  { %753 = vmatmul.mubr.bf16.vlgmr.msra.gmra.mrb[0].mxu0 %v810_v10  ;;  %769 = vmatmul.mubr.bf16.vlgmr.msra.gmra.mrb[0].mxu1 %v811_v11 }
  0x23   :  { %756 = vmatprep.mubr.bf16.mxu0 %v812_v12  ;;  %772 = vmatprep.mubr.bf16.mxu1 %v813_v13 }
  0x2a   :  { %757 = vmatmul.mubr.bf16.gmra.mrb[4].mxu0 %v814_v14  ;;  %773 = vmatmul.mubr.bf16.gmra.mrb[4].mxu1 %v815_v15 }
  0x2b   :  { %760 = vmatprep.mubr.bf16.mxu0 %v816_v16  ;;  %776 = vmatprep.mubr.bf16.mxu1 %v817_v17 }
  0x32   :  { %761 = vmatmul.mubr.bf16.gmra.mrb[8].mxu0 %v818_v18  ;;  %777 = vmatmul.mubr.bf16.gmra.mrb[8].mxu1 %v819_v19 }
  0x33   :  { %764 = vmatprep.mubr.bf16.mxu0 %v820_v20  ;;  %780 = vmatprep.mubr.bf16.mxu1 %v821_v21 }
  0x3a   :  { %765 = vmatmul.mubr.bf16.gmra.mrb[12].mxu0 %v822_v22  ;;  %781 = vmatmul.mubr.bf16.gmra.mrb[12].mxu1 %v823_v23 }
  0xf5   :  { %v754_v24 = vpop.f32.mrb[0].mxu0  ;;  %v770_v25 = vpop.f32.mrb[0].mxu1 }
  0xf6   :  { %v238_v26 = vpop.f32.mrb[1].mxu0  ;;  %v302_v27 = vpop.f32.mrb[1].mxu1 }
  0xf7   :  { %v755_v28 = vpop.f32.mrb[2].mxu0  ;;  %v771_v29 = vpop.f32.mrb[2].mxu1 }
  0xf8   :  { %v625_v30 = vpack.c.bf16 %v755_v28, %v754_v24  ;;  %v665_v31 = vpack.c.bf16 %v771_v29, %v770_v25  ;;  %v241_v32 = vpop.f32.mrb[3].mxu0  ;;  %v305_v33 = vpop.f32.mrb[3].mxu1 }
  0xf9   :  { %v620_v34 = vpack.c.bf16 %v241_v32, %v238_v26  ;;  %v660_v35 = vpack.c.bf16 %v305_v33, %v302_v27 }
  0xfa   :  { %697 = vst [vmem:[%s961_s2 + $0x8] sm:$0xff] %v625_v30   ;;  %705 = vst [vmem:[%s961_s2 + $0x48] sm:$0xff] %v665_v31  }
  0xfb   :  { %621 = vst [vmem:[%s961_s2] sm:$0xff] %v620_v34   ;;  %704 = vst [vmem:[%s961_s2 + $0x40] sm:$0xff] %v660_v35  }
  0xfd   :  { %v758_v36 = vpop.f32.mrb[4].mxu0  ;;  %v774_v37 = vpop.f32.mrb[4].mxu1 }
  0xfe   :  { %v254_v38 = vpop.f32.mrb[5].mxu0  ;;  %v318_v39 = vpop.f32.mrb[5].mxu1 }
  0xff   :  { %v759_v40 = vpop.f32.mrb[6].mxu0  ;;  %v775_v41 = vpop.f32.mrb[6].mxu1 }
 0x100   :  { %v635_v42 = vpack.c.bf16 %v759_v40, %v758_v36  ;;  %v675_v43 = vpack.c.bf16 %v775_v41, %v774_v37  ;;  %v257_v44 = vpop.f32.mrb[7].mxu0  ;;  %v321_v45 = vpop.f32.mrb[7].mxu1 }
 0x101   :  { %v630_v46 = vpack.c.bf16 %v257_v44, %v254_v38  ;;  %v670_v47 = vpack.c.bf16 %v321_v45, %v318_v39 }
 0x102   :  { %699 = vst [vmem:[%s961_s2 + $0x18] sm:$0xff] %v635_v42   ;;  %707 = vst [vmem:[%s961_s2 + $0x58] sm:$0xff] %v675_v43  }
 0x103   :  { %698 = vst [vmem:[%s961_s2 + $0x10] sm:$0xff] %v630_v46   ;;  %706 = vst [vmem:[%s961_s2 + $0x50] sm:$0xff] %v670_v47  }
 0x105   :  { %v762_v48 = vpop.f32.mrb[8].mxu0  ;;  %v778_v49 = vpop.f32.mrb[8].mxu1 }
 0x106   :  { %v270_v50 = vpop.f32.mrb[9].mxu0  ;;  %v334_v51 = vpop.f32.mrb[9].mxu1 }
 0x107   :  { %v763_v52 = vpop.f32.mrb[10].mxu0  ;;  %v779_v53 = vpop.f32.mrb[10].mxu1 }
 0x108   :  { %v645_v54 = vpack.c.bf16 %v763_v52, %v762_v48  ;;  %v685_v55 = vpack.c.bf16 %v779_v53, %v778_v49  ;;  %v273_v56 = vpop.f32.mrb[11].mxu0  ;;  %v337_v57 = vpop.f32.mrb[11].mxu1 }
 0x109   :  { %v640_v58 = vpack.c.bf16 %v273_v56, %v270_v50  ;;  %v680_v59 = vpack.c.bf16 %v337_v57, %v334_v51 }
 0x10a   :  { %701 = vst [vmem:[%s961_s2 + $0x28] sm:$0xff] %v645_v54   ;;  %709 = vst [vmem:[%s961_s2 + $0x68] sm:$0xff] %v685_v55  }
 0x10b   :  { %700 = vst [vmem:[%s961_s2 + $0x20] sm:$0xff] %v640_v58   ;;  %708 = vst [vmem:[%s961_s2 + $0x60] sm:$0xff] %v680_v59  }
 0x10d   :  { %v766_v60 = vpop.f32.mrb[12].mxu0  ;;  %v782_v61 = vpop.f32.mrb[12].mxu1 }
 0x10e   :  { %v286_v62 = vpop.f32.mrb[13].mxu0  ;;  %v350_v63 = vpop.f32.mrb[13].mxu1 }
 0x10f   :  { %v767_v0 = vpop.f32.mrb[14].mxu0  ;;  %v783_v1 = vpop.f32.mrb[14].mxu1 }
 0x110   :  { %v655_v2 = vpack.c.bf16 %v767_v0, %v766_v60  ;;  %v695_v3 = vpack.c.bf16 %v783_v1, %v782_v61  ;;  %v289_v4 = vpop.f32.mrb[15].mxu0  ;;  %v353_v5 = vpop.f32.mrb[15].mxu1 }
 0x111   :  { %v650_v6 = vpack.c.bf16 %v289_v4, %v286_v62  ;;  %v690_v7 = vpack.c.bf16 %v353_v5, %v350_v63 }
 0x112   :  { %703 = vst [vmem:[%s961_s2 + $0x38] sm:$0xff] %v655_v2   ;;  %711 = vst [vmem:[%s961_s2 + $0x78] sm:$0xff] %v695_v3  }
 0x113   :  { %702 = vst [vmem:[%s961_s2 + $0x30] sm:$0xff] %v650_v6   ;;  %710 = vst [vmem:[%s961_s2 + $0x70] sm:$0xff] %v690_v7  }

// kernel: gcn_forward.5
= control target key start
LH: loop header
LB: loop body
LE: loop exit
PB: predicated region body
PF: predicated region fallthrough
CT: control target
= control target key end

     0   :  { %s1980_s1 = inlined_call_operand.vmem [shape: bf16[256,128], index: 1, kind: input, shape index: {}]   ;;  %s1981_s0 = inlined_call_operand.vmem [shape: bf16[256,256], index: 0, kind: input, shape index: {}]   ;;  %s1982_s2 = inlined_call_operand.vmem [shape: f32[1,128], index: 2, kind: input, shape index: {}]   ;;  %s1983_s3 = inlined_call_operand.vmem [shape: f32[256,128], index: 3, kind: output, shape index: {}]  }
   0x1   :  { %v1235_v0 = vld [vmem:[%s1980_s1 + $0x40] sm:$0xff]   ;;  %v1237_v2 = vld [vmem:[%s1980_s1 + $0x48] sm:$0xff]   ;;  %v1239_v4 = vld [vmem:[%s1980_s1 + $0x50] sm:$0xff]  }
   0x2   :  { %v1236_v1 = vld [vmem:[%s1980_s1] sm:$0xff]   ;;  %1107 = vmatprep.subr.bf16.mxu0 %v1235_v0  ;;  %1219 = vmatprep.subr.bf16.mxu1 %v1235_v0  ;;  %v1238_v3 = vld [vmem:[%s1980_s1 + $0x8] sm:$0xff]   ;;  %v1240_v5 = vld [vmem:[%s1980_s1 + $0x10] sm:$0xff]  }
   0x3   :  { %1108 = vmatpush3.bf16.msra.mxu0 %v1236_v1  ;;  %1227 = vmatpush3.bf16.msra.mxu1 %v1236_v1  ;;  %v1241_v6 = vld [vmem:[%s1980_s1 + $0x58] sm:$0xff]   ;;  %v1243_v8 = vld [vmem:[%s1980_s1 + $0x60] sm:$0xff]   ;;  %v1245_v10 = vld [vmem:[%s1980_s1 + $0x68] sm:$0xff]  }
   0x4   :  { %1109 = vmatprep.subr.bf16.mxu0 %v1237_v2  ;;  %1220 = vmatprep.subr.bf16.mxu1 %v1237_v2  ;;  %v1242_v7 = vld [vmem:[%s1980_s1 + $0x18] sm:$0xff]   ;;  %v1244_v9 = vld [vmem:[%s1980_s1 + $0x20] sm:$0xff]   ;;  %v1246_v13 = vld [vmem:[%s1980_s1 + $0x28] sm:$0xff]  }
   0x5   :  { %v1253_v11 = vld [vmem:[%s1981_s0 + $0x4] ss:$8 sps:$4 sm:$0xff]   ;;  %v1247_v14 = vld [vmem:[%s1980_s1 + $0x70] sm:$0xff]   ;;  %v1249_v16 = vld [vmem:[%s1980_s1 + $0x78] sm:$0xff]  }
   0x6   :  { %v1256_v12 = vld [vmem:[%s1981_s0 + $0x84] ss:$8 sps:$4 sm:$0xff]   ;;  %435 = vmatprep.mubr.bf16.mxu0 %v1253_v11  ;;  %v1248_v15 = vld [vmem:[%s1980_s1 + $0x30] sm:$0xff]   ;;  %v1250_v17 = vld [vmem:[%s1980_s1 + $0x38] sm:$0xff]  }
   0x7   :  { %1110 = vmatpush3.bf16.msra.mxu0 %v1238_v3  ;;  %1228 = vmatpush3.bf16.msra.mxu1 %v1238_v3  ;;  %v1251_v18 = vld [vmem:[%s1981_s0] ss:$8 sps:$4 sm:$0xff]   ;;  %v1257_v20 = vld [vmem:[%s1981_s0 + $0x14] ss:$8 sps:$4 sm:$0xff]   ;;  %v1259_v22 = vld [vmem:[%s1981_s0 + $0x10] ss:$8 sps:$4 sm:$0xff]  }
   0x8   :  { %1111 = vmatprep.subr.bf16.mxu0 %v1239_v4  ;;  %1221 = vmatprep.subr.bf16.mxu1 %v1239_v4  ;;  %v1254_v19 = vld [vmem:[%s1981_s0 + $0x80] ss:$8 sps:$4 sm:$0xff]   ;;  %v1260_v21 = vld [vmem:[%s1981_s0 + $0x94] ss:$8 sps:$4 sm:$0xff]   ;;  %v1262_v23 = vld [vmem:[%s1981_s0 + $0x90] ss:$8 sps:$4 sm:$0xff]  }
   0x9   :  { %499 = vmatprep.mubr.bf16.mxu1 %v1256_v12  ;;  %v1263_v24 = vld [vmem:[%s1981_s0 + $0x24] ss:$8 sps:$4 sm:$0xff]   ;;  %v1265_v26 = vld [vmem:[%s1981_s0 + $0x20] ss:$8 sps:$4 sm:$0xff]   ;;  %v1269_v28 = vld [vmem:[%s1981_s0 + $0x34] ss:$8 sps:$4 sm:$0xff]  }
   0xa   :  { %v1266_v25 = vld [vmem:[%s1981_s0 + $0xa4] ss:$8 sps:$4 sm:$0xff]   ;;  %v1268_v27 = vld [vmem:[%s1981_s0 + $0xa0] ss:$8 sps:$4 sm:$0xff]   ;;  %v1272_v29 = vld [vmem:[%s1981_s0 + $0xb4] ss:$8 sps:$4 sm:$0xff]  }
   0xb   :  { %1112 = vmatpush3.bf16.msra.mxu0 %v1240_v5  ;;  %1229 = vmatpush3.bf16.msra.mxu1 %v1240_v5  ;;  %v1271_v30 = vld [vmem:[%s1981_s0 + $0x30] ss:$8 sps:$4 sm:$0xff]   ;;  %v1275_v32 = vld [vmem:[%s1981_s0 + $0x44] ss:$8 sps:$4 sm:$0xff]   ;;  %v1277_v34 = vld [vmem:[%s1981_s0 + $0x40] ss:$8 sps:$4 sm:$0xff]  }
   0xc   :  { %1113 = vmatprep.subr.bf16.mxu0 %v1241_v6  ;;  %1222 = vmatprep.subr.bf16.mxu1 %v1241_v6  ;;  %v1274_v31 = vld [vmem:[%s1981_s0 + $0xb0] ss:$8 sps:$4 sm:$0xff]   ;;  %v1278_v33 = vld [vmem:[%s1981_s0 + $0xc4] ss:$8 sps:$4 sm:$0xff]   ;;  %v1280_v35 = vld [vmem:[%s1981_s0 + $0xc0] ss:$8 sps:$4 sm:$0xff]  }
   0xd   :  { %v1281_v36 = vld [vmem:[%s1981_s0 + $0x54] ss:$8 sps:$4 sm:$0xff]   ;;  %v1283_v38 = vld [vmem:[%s1981_s0 + $0x50] ss:$8 sps:$4 sm:$0xff]   ;;  %v1287_v40 = vld [vmem:[%s1981_s0 + $0x64] ss:$8 sps:$4 sm:$0xff]  }
   0xe   :  { %v1284_v37 = vld [vmem:[%s1981_s0 + $0xd4] ss:$8 sps:$4 sm:$0xff]   ;;  %v1286_v39 = vld [vmem:[%s1981_s0 + $0xd0] ss:$8 sps:$4 sm:$0xff]   ;;  %v1290_v41 = vld [vmem:[%s1981_s0 + $0xe4] ss:$8 sps:$4 sm:$0xff]  }
   0xf   :  { %1114 = vmatpush3.bf16.msra.mxu0 %v1242_v7  ;;  %1230 = vmatpush3.bf16.msra.mxu1 %v1242_v7  ;;  %v1289_v42 = vld [vmem:[%s1981_s0 + $0x60] ss:$8 sps:$4 sm:$0xff]   ;;  %v1293_v44 = vld [vmem:[%s1981_s0 + $0x74] ss:$8 sps:$4 sm:$0xff]   ;;  %v1295_v46 = vld [vmem:[%s1981_s0 + $0x70] ss:$8 sps:$4 sm:$0xff]  }
  0x10   :  { %1115 = vmatprep.subr.bf16.mxu0 %v1243_v8  ;;  %1223 = vmatprep.subr.bf16.mxu1 %v1243_v8  ;;  %v1292_v43 = vld [vmem:[%s1981_s0 + $0xe0] ss:$8 sps:$4 sm:$0xff]   ;;  %v1296_v45 = vld [vmem:[%s1981_s0 + $0xf4] ss:$8 sps:$4 sm:$0xff]   ;;  %v1298_v47 = vld [vmem:[%s1981_s0 + $0xf0] ss:$8 sps:$4 sm:$0xff]  }
  0x11   :  { %v1594_v52 = vld [vmem:[%s1982_s2] ss:$0 sm:$0xff] }
  0x13   :  { %1116 = vmatpush3.bf16.msra.mxu0 %v1244_v9  ;;  %1231 = vmatpush3.bf16.msra.mxu1 %v1244_v9 }
  0x14   :  { %1117 = vmatprep.subr.bf16.mxu0 %v1245_v10  ;;  %1224 = vmatprep.subr.bf16.mxu1 %v1245_v10 }
  0x17   :  { %1118 = vmatpush3.bf16.msra.mxu0 %v1246_v13  ;;  %1232 = vmatpush3.bf16.msra.mxu1 %v1246_v13 }
  0x18   :  { %1119 = vmatprep.subr.bf16.mxu0 %v1247_v14  ;;  %1225 = vmatprep.subr.bf16.mxu1 %v1247_v14 }
  0x1b   :  { %1120 = vmatpush3.bf16.msra.mxu0 %v1248_v15  ;;  %1233 = vmatpush3.bf16.msra.mxu1 %v1248_v15 }
  0x1c   :  { %1121 = vmatprep.subr.bf16.mxu0 %v1249_v16  ;;  %1226 = vmatprep.subr.bf16.mxu1 %v1249_v16 }
  0x1f   :  { %1122 = vmatpush3.bf16.msra.mxu0 %v1250_v17  ;;  %1234 = vmatpush3.bf16.msra.mxu1 %v1250_v17 }
  0x22   :  { %436 = vmatmul.mubr.bf16.vlgmr.msra.gmra.mrb[0].mxu0 %v1251_v18  ;;  %500 = vmatmul.mubr.bf16.vlgmr.msra.gmra.mrb[0].mxu1 %v1254_v19 }
  0x23   :  { %443 = vmatprep.mubr.bf16.mxu0 %v1257_v20  ;;  %507 = vmatprep.mubr.bf16.mxu1 %v1260_v21 }
  0x2a   :  { %444 = vmatmul.mubr.bf16.gmra.mrb[4].mxu0 %v1259_v22  ;;  %508 = vmatmul.mubr.bf16.gmra.mrb[4].mxu1 %v1262_v23 }
  0x2b   :  { %451 = vmatprep.mubr.bf16.mxu0 %v1263_v24  ;;  %515 = vmatprep.mubr.bf16.mxu1 %v1266_v25 }
  0x32   :  { %452 = vmatmul.mubr.bf16.gmra.mrb[8].mxu0 %v1265_v26  ;;  %516 = vmatmul.mubr.bf16.gmra.mrb[8].mxu1 %v1268_v27 }
  0x33   :  { %459 = vmatprep.mubr.bf16.mxu0 %v1269_v28  ;;  %523 = vmatprep.mubr.bf16.mxu1 %v1272_v29 }
  0x3a   :  { %460 = vmatmul.mubr.bf16.gmra.mrb[12].mxu0 %v1271_v30  ;;  %524 = vmatmul.mubr.bf16.gmra.mrb[12].mxu1 %v1274_v31 }
  0x3b   :  { %467 = vmatprep.mubr.bf16.mxu0 %v1275_v32  ;;  %531 = vmatprep.mubr.bf16.mxu1 %v1278_v33 }
  0x42   :  { %468 = vmatmul.mubr.bf16.gmra.mrb[16].mxu0 %v1277_v34  ;;  %532 = vmatmul.mubr.bf16.gmra.mrb[16].mxu1 %v1280_v35 }
  0x43   :  { %475 = vmatprep.mubr.bf16.mxu0 %v1281_v36  ;;  %539 = vmatprep.mubr.bf16.mxu1 %v1284_v37 }
  0x4a   :  { %476 = vmatmul.mubr.bf16.gmra.mrb[20].mxu0 %v1283_v38  ;;  %540 = vmatmul.mubr.bf16.gmra.mrb[20].mxu1 %v1286_v39 }
  0x4b   :  { %483 = vmatprep.mubr.bf16.mxu0 %v1287_v40  ;;  %547 = vmatprep.mubr.bf16.mxu1 %v1290_v41 }
  0x52   :  { %484 = vmatmul.mubr.bf16.gmra.mrb[24].mxu0 %v1289_v42  ;;  %548 = vmatmul.mubr.bf16.gmra.mrb[24].mxu1 %v1292_v43 }
  0x53   :  { %491 = vmatprep.mubr.bf16.mxu0 %v1293_v44  ;;  %555 = vmatprep.mubr.bf16.mxu1 %v1296_v45 }
  0x5a   :  { %492 = vmatmul.mubr.bf16.gmra.mrb[28].mxu0 %v1295_v46  ;;  %556 = vmatmul.mubr.bf16.gmra.mrb[28].mxu1 %v1298_v47 }
  0xf5   :  { %v1123_v48 = vpop.f32.mrb[0].mxu0  ;;  %v1171_v49 = vpop.f32.mrb[0].mxu1 }
  0xf6   :  { %v1124_v50 = vpop.f32.mrb[1].mxu0  ;;  %v1172_v51 = vpop.f32.mrb[1].mxu1 }
  0xf7   :  { %v1125_v53 = vadd.f32 %v1124_v50, %v1123_v48  ;;  %v1173_v54 = vadd.f32 %v1172_v51, %v1171_v49  ;;  %v1126_v55 = vpop.f32.mrb[2].mxu0  ;;  %v1174_v56 = vpop.f32.mrb[2].mxu1 }
  0xf8   :  { %v1127_v57 = vpop.f32.mrb[3].mxu0  ;;  %v1175_v58 = vpop.f32.mrb[3].mxu1 }
  0xf9   :  { %v1128_v59 = vadd.f32 %v1127_v57, %v1126_v55  ;;  %v1176_v60 = vadd.f32 %v1175_v58, %v1174_v56  ;;  %v1597_v61 = vadd.f32 %v1125_v53, %v1594_v52  ;;  %v1604_v63 = vadd.f32 %v1173_v54, %v1594_v52 }
  0xfb   :  { %702 = vmax.xlane.f32.xlu0 %v1597_v61  ;;  %v1601_v62 = vadd.f32 %v1176_v60, %v1594_v52  ;;  %v1612_v12 = vadd.f32 %v1128_v59, %v1594_v52 }
  0xfd   :  { %736 = vmax.xlane.f32.xlu1 %v1601_v62  ;;  %v1129_v0 = vpop.f32.mrb[4].mxu0  ;;  %v1177_v1 = vpop.f32.mrb[4].mxu1 }
  0xfe   :  { %v1130_v2 = vpop.f32.mrb[5].mxu0  ;;  %v1178_v3 = vpop.f32.mrb[5].mxu1 }
  0xff   :  { %v1131_v4 = vadd.f32 %v1130_v2, %v1129_v0  ;;  %734 = vmax.xlane.f32.xlu0 %v1604_v63  ;;  %v1132_v5 = vpop.f32.mrb[6].mxu0  ;;  %v1179_v6 = vadd.f32 %v1178_v3, %v1177_v1  ;;  %v1180_v7 = vpop.f32.mrb[6].mxu1 }
 0x100   :  { %v1133_v8 = vpop.f32.mrb[7].mxu0  ;;  %v1181_v9 = vpop.f32.mrb[7].mxu1 }
 0x101   :  { %v1134_v10 = vadd.f32 %v1133_v8, %v1132_v5  ;;  %v1609_v11 = vadd.f32 %v1131_v4, %v1594_v52  ;;  %v1182_v13 = vadd.f32 %v1181_v9, %v1180_v7  ;;  %v1620_v15 = vadd.f32 %v1179_v6, %v1594_v52 }
 0x103   :  { %706 = vmax.xlane.f32.xlu1 %v1609_v11  ;;  %704 = vmax.xlane.f32.xlu0 %v1612_v12  ;;  %v1617_v14 = vadd.f32 %v1134_v10, %v1594_v52  ;;  %v1625_v23 = vadd.f32 %v1182_v13, %v1594_v52 }
 0x105   :  { %v1135_v16 = vpop.f32.mrb[8].mxu0  ;;  %v1183_v17 = vpop.f32.mrb[8].mxu1 }
 0x106   :  { %v1136_v18 = vpop.f32.mrb[9].mxu0  ;;  %v1184_v19 = vpop.f32.mrb[9].mxu1 }
 0x107   :  { %v1137_v20 = vadd.f32 %v1136_v18, %v1135_v16  ;;  %708 = vmax.xlane.f32.xlu1 %v1617_v14  ;;  %738 = vmax.xlane.f32.xlu0 %v1620_v15  ;;  %v1138_v21 = vpop.f32.mrb[10].mxu0  ;;  %v1185_v22 = vadd.f32 %v1184_v19, %v1183_v17  ;;  %v1186_v24 = vpop.f32.mrb[10].mxu1 }
 0x108   :  { %v1139_v25 = vpop.f32.mrb[11].mxu0  ;;  %v1187_v26 = vpop.f32.mrb[11].mxu1 }
 0x109   :  { %v1140_v27 = vadd.f32 %v1139_v25, %v1138_v21  ;;  %v1628_v28 = vadd.f32 %v1137_v20, %v1594_v52  ;;  %v1188_v29 = vadd.f32 %v1187_v26, %v1186_v24  ;;  %v1636_v31 = vadd.f32 %v1185_v22, %v1594_v52 }
 0x10b   :  { %740 = vmax.xlane.f32.xlu1 %v1625_v23  ;;  %710 = vmax.xlane.f32.xlu0 %v1628_v28  ;;  %v1633_v30 = vadd.f32 %v1140_v27, %v1594_v52  ;;  %v1641_v39 = vadd.f32 %v1188_v29, %v1594_v52 }
 0x10d   :  { %v1141_v32 = vpop.f32.mrb[12].mxu0  ;;  %v1189_v33 = vpop.f32.mrb[12].mxu1 }
 0x10e   :  { %v1142_v34 = vpop.f32.mrb[13].mxu0  ;;  %v1190_v35 = vpop.f32.mrb[13].mxu1 }
 0x10f   :  { %v1143_v36 = vadd.f32 %v1142_v34, %v1141_v32  ;;  %712 = vmax.xlane.f32.xlu1 %v1633_v30  ;;  %742 = vmax.xlane.f32.xlu0 %v1636_v31  ;;  %v1144_v37 = vpop.f32.mrb[14].mxu0  ;;  %v1191_v38 = vadd.f32 %v1190_v35, %v1189_v33  ;;  %v1192_v40 = vpop.f32.mrb[14].mxu1 }
 0x110   :  { %v1145_v41 = vpop.f32.mrb[15].mxu0  ;;  %v1193_v42 = vpop.f32.mrb[15].mxu1 }
 0x111   :  { %v1146_v43 = vadd.f32 %v1145_v41, %v1144_v37  ;;  %v1644_v44 = vadd.f32 %v1143_v36, %v1594_v52  ;;  %v1194_v45 = vadd.f32 %v1193_v42, %v1192_v40  ;;  %v1652_v47 = vadd.f32 %v1191_v38, %v1594_v52 }
 0x113   :  { %744 = vmax.xlane.f32.xlu1 %v1641_v39  ;;  %714 = vmax.xlane.f32.xlu0 %v1644_v44  ;;  %v1649_v46 = vadd.f32 %v1146_v43, %v1594_v52  ;;  %v1657_v56 = vadd.f32 %v1194_v45, %v1594_v52 }
 0x115   :  { %v1147_v48 = vpop.f32.mrb[16].mxu0  ;;  %v1195_v49 = vpop.f32.mrb[16].mxu1 }
 0x116   :  { %v1148_v50 = vpop.f32.mrb[17].mxu0  ;;  %v1196_v51 = vpop.f32.mrb[17].mxu1 }
 0x117   :  { %v1149_v53 = vadd.f32 %v1148_v50, %v1147_v48  ;;  %716 = vmax.xlane.f32.xlu1 %v1649_v46  ;;  %746 = vmax.xlane.f32.xlu0 %v1652_v47  ;;  %v1150_v54 = vpop.f32.mrb[18].mxu0  ;;  %v1197_v55 = vadd.f32 %v1196_v51, %v1195_v49  ;;  %v1198_v57 = vpop.f32.mrb[18].mxu1 }
 0x118   :  { %v1151_v58 = vpop.f32.mrb[19].mxu0  ;;  %v1199_v59 = vpop.f32.mrb[19].mxu1 }
 0x119   :  { %v1152_v60 = vadd.f32 %v1151_v58, %v1150_v54  ;;  %v1660_v0 = vadd.f32 %v1149_v53, %v1594_v52  ;;  %v1200_v1 = vadd.f32 %v1199_v59, %v1198_v57  ;;  %v1668_v3 = vadd.f32 %v1197_v55, %v1594_v52 }
 0x11b   :  { %748 = vmax.xlane.f32.xlu1 %v1657_v56  ;;  %718 = vmax.xlane.f32.xlu0 %v1660_v0  ;;  %v1665_v2 = vadd.f32 %v1152_v60, %v1594_v52  ;;  %v1673_v13 = vadd.f32 %v1200_v1, %v1594_v52 }
 0x11d   :  { %v1153_v4 = vpop.f32.mrb[20].mxu0  ;;  %v1201_v5 = vpop.f32.mrb[20].mxu1 }
 0x11e   :  { %v1154_v6 = vpop.f32.mrb[21].mxu0  ;;  %v1202_v7 = vpop.f32.mrb[21].mxu1 }
 0x11f   :  { %v1155_v8 = vadd.f32 %v1154_v6, %v1153_v4  ;;  %720 = vmax.xlane.f32.xlu1 %v1665_v2  ;;  %750 = vmax.xlane.f32.xlu0 %v1668_v3  ;;  %v1156_v9 = vpop.f32.mrb[22].mxu0  ;;  %v1203_v10 = vadd.f32 %v1202_v7, %v1201_v5  ;;  %v1204_v16 = vpop.f32.mrb[22].mxu1 }
 0x120   :  { %v1157_v17 = vpop.f32.mrb[23].mxu0  ;;  %v1205_v18 = vpop.f32.mrb[23].mxu1 }
 0x121   :  { %v1158_v19 = vadd.f32 %v1157_v17, %v1156_v9  ;;  %v1676_v20 = vadd.f32 %v1155_v8, %v1594_v52  ;;  %v1206_v21 = vadd.f32 %v1205_v18, %v1204_v16  ;;  %v1684_v24 = vadd.f32 %v1203_v10, %v1594_v52 }
 0x123   :  { %752 = vmax.xlane.f32.xlu1 %v1673_v13  ;;  %722 = vmax.xlane.f32.xlu0 %v1676_v20  ;;  %v1681_v22 = vadd.f32 %v1158_v19, %v1594_v52  ;;  %v1689_v35 = vadd.f32 %v1206_v21, %v1594_v52 }
 0x125   :  { %v1159_v25 = vpop.f32.mrb[24].mxu0  ;;  %v1207_v26 = vpop.f32.mrb[24].mxu1 }
 0x126   :  { %v1160_v27 = vpop.f32.mrb[25].mxu0  ;;  %v1208_v29 = vpop.f32.mrb[25].mxu1 }
 0x127   :  { %v1161_v32 = vadd.f32 %v1160_v27, %v1159_v25  ;;  %724 = vmax.xlane.f32.xlu1 %v1681_v22  ;;  %754 = vmax.xlane.f32.xlu0 %v1684_v24  ;;  %v1162_v33 = vpop.f32.mrb[26].mxu0  ;;  %v1209_v34 = vadd.f32 %v1208_v29, %v1207_v26  ;;  %v1210_v36 = vpop.f32.mrb[26].mxu1 }
 0x128   :  { %v1163_v37 = vpop.f32.mrb[27].mxu0  ;;  %v1211_v38 = vpop.f32.mrb[27].mxu1 }
 0x129   :  { %v1164_v40 = vadd.f32 %v1163_v37, %v1162_v33  ;;  %v1692_v41 = vadd.f32 %v1161_v32, %v1594_v52  ;;  %v1212_v42 = vadd.f32 %v1211_v38, %v1210_v36  ;;  %v1700_v45 = vadd.f32 %v1209_v34, %v1594_v52 }
 0x12b   :  { %756 = vmax.xlane.f32.xlu1 %v1689_v35  ;;  %726 = vmax.xlane.f32.xlu0 %v1692_v41  ;;  %v1697_v43 = vadd.f32 %v1164_v40, %v1594_v52  ;;  %v1705_v57 = vadd.f32 %v1212_v42, %v1594_v52 }
 0x12d   :  { %v1165_v48 = vpop.f32.mrb[28].mxu0  ;;  %v1213_v49 = vpop.f32.mrb[28].mxu1 }
 0x12e   :  { %v1166_v50 = vpop.f32.mrb[29].mxu0  ;;  %v1214_v51 = vpop.f32.mrb[29].mxu1 }
 0x12f   :  { %v1167_v53 = vadd.f32 %v1166_v50, %v1165_v48  ;;  %728 = vmax.xlane.f32.xlu1 %v1697_v43  ;;  %758 = vmax.xlane.f32.xlu0 %v1700_v45  ;;  %v1168_v54 = vpop.f32.mrb[30].mxu0  ;;  %v1215_v55 = vadd.f32 %v1214_v51, %v1213_v49  ;;  %v1216_v58 = vpop.f32.mrb[30].mxu1 }
 0x130   :  { %v1169_v59 = vpop.f32.mrb[31].mxu0  ;;  %v1217_v60 = vpop.f32.mrb[31].mxu1 }
 0x131   :  { %v1170_v1 = vadd.f32 %v1169_v59, %v1168_v54  ;;  %v1708_v4 = vadd.f32 %v1167_v53, %v1594_v52  ;;  %v1218_v5 = vadd.f32 %v1217_v60, %v1216_v58  ;;  %v1716_v7 = vadd.f32 %v1215_v55, %v1594_v52 }
 0x133   :  { %760 = vmax.xlane.f32.xlu1 %v1705_v57  ;;  %730 = vmax.xlane.f32.xlu0 %v1708_v4  ;;  %v1713_v6 = vadd.f32 %v1170_v1, %v1594_v52  ;;  %v1719_v8 = vadd.f32 %v1218_v5, %v1594_v52 }
 0x137   :  { %732 = vmax.xlane.f32.xlu1 %v1713_v6  ;;  %762 = vmax.xlane.f32.xlu0 %v1716_v7 }
 0x13b   :  { %764 = vmax.xlane.f32.xlu1 %v1719_v8 }
 0x188   :  { %v703_v9 = vpop.xlane.xlu0 %702 }
 0x189   :  { %v1725_v10 = vsub.f32 %v1597_v61, %v703_v9 }
 0x18a   :  { %v737_v17 = vpop.xlane.xlu1 %736 }
 0x18b   :  { %v798_v16 = vmul.f32 1.442695, %v1725_v10  ;;  %v1733_v26 = vsub.f32 %v1601_v62, %v737_v17 }
 0x18c   :  { %v735_v18 = vpop.xlane.xlu0 %734 }
 0x18d   :  { %1299 = vpow2.f32 %v798_v16  ;;  %v1729_v19 = vsub.f32 %v1604_v63, %v735_v18  ;;  %v832_v34 = vmul.f32 1.442695, %v1733_v26 }
 0x18f   :  { %v830_v52 = vmul.f32 1.442695, %v1729_v19 }
 0x190   :  { %v707_v21 = vpop.xlane.xlu1 %706  ;;  %v705_v25 = vpop.xlane.xlu0 %704 }
 0x191   :  { %1301 = vpow2.f32 %v830_v52  ;;  %v1736_v27 = vsub.f32 %v1609_v11, %v707_v21  ;;  %v1739_v61 = vsub.f32 %v1612_v12, %v705_v25 }
 0x193   :  { %v802_v29 = vmul.f32 1.442695, %v1736_v27  ;;  %v800_v32 = vmul.f32 1.442695, %v1739_v61 }
 0x194   :  { %v709_v63 = vpop.xlane.xlu1 %708  ;;  %v739_v33 = vpop.xlane.xlu0 %738 }
 0x195   :  { %1303 = vpow2.f32 %v802_v29  ;;  %v1745_v36 = vsub.f32 %v1617_v14, %v709_v63  ;;  %v1748_v62 = vsub.f32 %v1620_v15, %v739_v33 }
 0x196   :  { %1305 = vpow2.f32 %v800_v32 }
 0x197   :  { %v1300_v11 = vpop.eup %1299  ;;  %v834_v12 = vmul.f32 1.442695, %v1748_v62  ;;  %1307 = vpow2.f32 %v832_v34  ;;  %v804_v40 = vmul.f32 1.442695, %v1745_v36 }
 0x198   :  { %v741_v37 = vpop.xlane.xlu1 %740  ;;  %862 = vadd.xlane.f32.xlu0 %v1300_v11  ;;  %v711_v38 = vpop.xlane.xlu0 %710 }
 0x199   :  { %v1753_v42 = vsub.f32 %v1625_v23, %v741_v37  ;;  %v1756_v48 = vsub.f32 %v1628_v28, %v711_v38  ;;  %1309 = vpow2.f32 %v834_v12 }
 0x19a   :  { %1311 = vpow2.f32 %v804_v40 }
 0x19b   :  { %v1302_v14 = vpop.eup %1301  ;;  %v806_v15 = vmul.f32 1.442695, %v1756_v48  ;;  %v836_v51 = vmul.f32 1.442695, %v1753_v42 }
 0x19c   :  { %v713_v49 = vpop.xlane.xlu1 %712  ;;  %894 = vadd.xlane.f32.xlu0 %v1302_v14  ;;  %v743_v50 = vpop.xlane.xlu0 %742 }
 0x19d   :  { %v1761_v53 = vsub.f32 %v1633_v30, %v713_v49  ;;  %v1764_v54 = vsub.f32 %v1636_v31, %v743_v50  ;;  %1313 = vpow2.f32 %v806_v15 }
 0x19e   :  { %1315 = vpow2.f32 %v836_v51 }
 0x19f   :  { %v1304_v23 = vpop.eup %1303  ;;  %v838_v28 = vmul.f32 1.442695, %v1764_v54  ;;  %v808_v60 = vmul.f32 1.442695, %v1761_v53 }
 0x1a0   :  { %v1306_v55 = vpop.eup %1305  ;;  %v745_v58 = vpop.xlane.xlu1 %744  ;;  %866 = vadd.xlane.f32.xlu0 %v1304_v23 }
 0x1a1   :  { %v715_v59 = vpop.xlane.xlu0 %714  ;;  %v1769_v1 = vsub.f32 %v1641_v39, %v745_v58  ;;  %864 = vadd.xlane.f32.xlu1 %v1306_v55  ;;  %1317 = vpow2.f32 %v838_v28  ;;  %v1308_v31 = vpop.eup %1307 }
 0x1a2   :  { %v1772_v30 = vsub.f32 %v1644_v44, %v715_v59  ;;  %1319 = vpow2.f32 %v808_v60 }
 0x1a3   :  { %v1310_v9 = vpop.eup %1309  ;;  %v840_v18 = vmul.f32 1.442695, %v1769_v1 }
 0x1a4   :  { %v810_v5 = vmul.f32 1.442695, %v1772_v30  ;;  %v717_v16 = vpop.xlane.xlu1 %716  ;;  %898 = vadd.xlane.f32.xlu0 %v1310_v9  ;;  %v1312_v44 = vpop.eup %1311 }
 0x1a5   :  { %v747_v17 = vpop.xlane.xlu0 %746  ;;  %v1777_v52 = vsub.f32 %v1649_v46, %v717_v16  ;;  %896 = vadd.xlane.f32.xlu1 %v1308_v31 }
 0x1a6   :  { %v1780_v39 = vsub.f32 %v1652_v47, %v747_v17  ;;  %1321 = vpow2.f32 %v810_v5 }
 0x1a7   :  { %v1314_v25 = vpop.eup %1313  ;;  %1323 = vpow2.f32 %v840_v18  ;;  %v812_v63 = vmul.f32 1.442695, %v1777_v52 }
 0x1a8   :  { %v842_v21 = vmul.f32 1.442695, %v1780_v39  ;;  %v749_v29 = vpop.xlane.xlu1 %748  ;;  %870 = vadd.xlane.f32.xlu0 %v1314_v25  ;;  %v1316_v47 = vpop.eup %1315 }
 0x1a9   :  { %v719_v32 = vpop.xlane.xlu0 %718  ;;  %v1785_v33 = vsub.f32 %v1657_v56, %v749_v29  ;;  %868 = vadd.xlane.f32.xlu1 %v1312_v44 }
 0x1aa   :  { %v1788_v46 = vsub.f32 %v1660_v0, %v719_v32  ;;  %1325 = vpow2.f32 %v842_v21 }
 0x1ab   :  { %v1318_v11 = vpop.eup %1317  ;;  %1327 = vpow2.f32 %v812_v63  ;;  %v844_v38 = vmul.f32 1.442695, %v1785_v33 }
 0x1ac   :  { %v814_v34 = vmul.f32 1.442695, %v1788_v46  ;;  %v721_v12 = vpop.xlane.xlu1 %720  ;;  %902 = vadd.xlane.f32.xlu0 %v1318_v11  ;;  %v1320_v0 = vpop.eup %1319 }
 0x1ad   :  { %v751_v37 = vpop.xlane.xlu0 %750  ;;  %v1793_v40 = vsub.f32 %v1665_v2, %v721_v12  ;;  %900 = vadd.xlane.f32.xlu1 %v1316_v47 }
 0x1ae   :  { %v1796_v56 = vsub.f32 %v1668_v3, %v751_v37  ;;  %1329 = vpow2.f32 %v814_v34 }
 0x1af   :  { %1331 = vpow2.f32 %v844_v38  ;;  %v816_v51 = vmul.f32 1.442695, %v1793_v40 }
 0x1b0   :  { %v846_v14 = vmul.f32 1.442695, %v1796_v56  ;;  %v1322_v15 = vpop.eup %1321  ;;  %v753_v49 = vpop.xlane.xlu1 %752 }
 0x1b1   :  { %v723_v50 = vpop.xlane.xlu0 %722  ;;  %v1801_v23 = vsub.f32 %v1673_v13, %v753_v49  ;;  %872 = vadd.xlane.f32.xlu1 %v1320_v0  ;;  %874 = vadd.xlane.f32.xlu0 %v1322_v15  ;;  %v1324_v3 = vpop.eup %1323 }
 0x1b2   :  { %v1804_v2 = vsub.f32 %v1676_v20, %v723_v50  ;;  %1333 = vpow2.f32 %v846_v14 }
 0x1b3   :  { %1335 = vpow2.f32 %v816_v51  ;;  %v848_v60 = vmul.f32 1.442695, %v1801_v23 }
 0x1b4   :  { %v818_v28 = vmul.f32 1.442695, %v1804_v2  ;;  %v1326_v55 = vpop.eup %1325  ;;  %v725_v58 = vpop.xlane.xlu1 %724 }
 0x1b5   :  { %v755_v59 = vpop.xlane.xlu0 %754  ;;  %v1809_v31 = vsub.f32 %v1681_v22, %v725_v58  ;;  %904 = vadd.xlane.f32.xlu1 %v1324_v3  ;;  %906 = vadd.xlane.f32.xlu0 %v1326_v55  ;;  %v1328_v20 = vpop.eup %1327 }
 0x1b6   :  { %v1812_v13 = vsub.f32 %v1684_v24, %v755_v59  ;;  %1337 = vpow2.f32 %v818_v28 }
 0x1b7   :  { %1339 = vpow2.f32 %v848_v60  ;;  %v820_v18 = vmul.f32 1.442695, %v1809_v31 }
 0x1b8   :  { %v850_v5 = vmul.f32 1.442695, %v1812_v13  ;;  %v1330_v9 = vpop.eup %1329  ;;  %v757_v16 = vpop.xlane.xlu1 %756 }
 0x1b9   :  { %v727_v17 = vpop.xlane.xlu0 %726  ;;  %v1817_v44 = vsub.f32 %v1689_v35, %v757_v16  ;;  %876 = vadd.xlane.f32.xlu1 %v1328_v20  ;;  %878 = vadd.xlane.f32.xlu0 %v1330_v9  ;;  %v1332_v24 = vpop.eup %1331 }
 0x1ba   :  { %v1820_v22 = vsub.f32 %v1692_v41, %v727_v17  ;;  %1341 = vpow2.f32 %v850_v5 }
 0x1bb   :  { %1343 = vpow2.f32 %v820_v18  ;;  %v852_v63 = vmul.f32 1.442695, %v1817_v44 }
 0x1bc   :  { %v822_v21 = vmul.f32 1.442695, %v1820_v22  ;;  %v1334_v25 = vpop.eup %1333  ;;  %v729_v29 = vpop.xlane.xlu1 %728 }
 0x1bd   :  { %v759_v32 = vpop.xlane.xlu0 %758  ;;  %v1825_v47 = vsub.f32 %v1697_v43, %v729_v29  ;;  %908 = vadd.xlane.f32.xlu1 %v1332_v24  ;;  %910 = vadd.xlane.f32.xlu0 %v1334_v25  ;;  %v1336_v41 = vpop.eup %1335 }
 0x1be   :  { %v1828_v35 = vsub.f32 %v1700_v45, %v759_v32  ;;  %1345 = vpow2.f32 %v822_v21 }
 0x1bf   :  { %1347 = vpow2.f32 %v852_v63  ;;  %v824_v38 = vmul.f32 1.442695, %v1825_v47 }
 0x1c0   :  { %v854_v34 = vmul.f32 1.442695, %v1828_v35  ;;  %v1338_v11 = vpop.eup %1337  ;;  %v761_v12 = vpop.xlane.xlu1 %760 }
 0x1c1   :  { %v731_v37 = vpop.xlane.xlu0 %730  ;;  %v1833_v0 = vsub.f32 %v1705_v57, %v761_v12  ;;  %880 = vadd.xlane.f32.xlu1 %v1336_v41  ;;  %882 = vadd.xlane.f32.xlu0 %v1338_v11  ;;  %v1340_v45 = vpop.eup %1339 }
 0x1c2   :  { %v1836_v43 = vsub.f32 %v1708_v4, %v731_v37  ;;  %1349 = vpow2.f32 %v854_v34 }
 0x1c3   :  { %1351 = vpow2.f32 %v824_v38  ;;  %v856_v51 = vmul.f32 1.442695, %v1833_v0 }
 0x1c4   :  { %v826_v14 = vmul.f32 1.442695, %v1836_v43  ;;  %v1342_v15 = vpop.eup %1341  ;;  %v733_v49 = vpop.xlane.xlu1 %732 }
 0x1c5   :  { %v763_v50 = vpop.xlane.xlu0 %762  ;;  %912 = vadd.xlane.f32.xlu1 %v1340_v45  ;;  %914 = vadd.xlane.f32.xlu0 %v1342_v15  ;;  %v1844_v3 = vsub.f32 %v1713_v6, %v733_v49  ;;  %v1344_v4 = vpop.eup %1343 }
 0x1c6   :  { %v1841_v57 = vsub.f32 %v1716_v7, %v763_v50  ;;  %1353 = vpow2.f32 %v826_v14 }
 0x1c7   :  { %1355 = vpow2.f32 %v856_v51  ;;  %v828_v59 = vmul.f32 1.442695, %v1844_v3 }
 0x1c8   :  { %v858_v28 = vmul.f32 1.442695, %v1841_v57  ;;  %v1346_v55 = vpop.eup %1345  ;;  %v765_v58 = vpop.xlane.xlu1 %764 }
 0x1c9   :  { %884 = vadd.xlane.f32.xlu1 %v1344_v4  ;;  %886 = vadd.xlane.f32.xlu0 %v1346_v55  ;;  %v1849_v60 = vsub.f32 %v1719_v8, %v765_v58  ;;  %v1348_v7 = vpop.eup %1347 }
 0x1ca   :  { %1357 = vpow2.f32 %v858_v28 }
 0x1cb   :  { %1359 = vpow2.f32 %v828_v59  ;;  %v860_v6 = vmul.f32 1.442695, %v1849_v60 }
 0x1cc   :  { %v1350_v20 = vpop.eup %1349 }
 0x1cd   :  { %916 = vadd.xlane.f32.xlu1 %v1348_v7  ;;  %918 = vadd.xlane.f32.xlu0 %v1350_v20  ;;  %v1352_v5 = vpop.eup %1351  ;;  %1361 = vpow2.f32 %v860_v6 }
 0x1d0   :  { %v1354_v9 = vpop.eup %1353 }
 0x1d1   :  { %888 = vadd.xlane.f32.xlu1 %v1352_v5  ;;  %890 = vadd.xlane.f32.xlu0 %v1354_v9  ;;  %v1356_v16 = vpop.eup %1355 }
 0x1d4   :  { %v1358_v17 = vpop.eup %1357 }
 0x1d5   :  { %920 = vadd.xlane.f32.xlu1 %v1356_v16  ;;  %922 = vadd.xlane.f32.xlu0 %v1358_v17  ;;  %v1360_v18 = vpop.eup %1359 }
 0x1d7   :  { %v1362_v8 = vpop.eup %1361 }
 0x1d9   :  { %892 = vadd.xlane.f32.xlu1 %v1360_v18 }
 0x1dd   :  { %924 = vadd.xlane.f32.xlu1 %v1362_v8 }
 0x225   :  { %v863_v24 = vpop.xlane.xlu0 %862 }
 0x226   :  { %1363 = vlog2.f32 %v863_v24 }
 0x229   :  { %v895_v21 = vpop.xlane.xlu0 %894 }
 0x22a   :  { %1365 = vlog2.f32 %v895_v21 }
 0x22d   :  { %v867_v25 = vpop.xlane.xlu0 %866 }
 0x22e   :  { %v865_v29 = vpop.xlane.xlu1 %864  ;;  %1367 = vlog2.f32 %v867_v25 }
 0x22f   :  { %1369 = vlog2.f32 %v865_v29 }
 0x230   :  { %v1364_v32 = vpop.eup %1363 }
 0x231   :  { %v927_v63 = vmul.f32 0.6931472, %v1364_v32  ;;  %v899_v34 = vpop.xlane.xlu0 %898 }
 0x232   :  { %v897_v41 = vpop.xlane.xlu1 %896 }
 0x233   :  { %v990_v11 = vsub.f32 %v1725_v10, %v927_v63  ;;  %1371 = vlog2.f32 %v897_v41 }
 0x234   :  { %v1366_v12 = vpop.eup %1365  ;;  %1373 = vlog2.f32 %v899_v34 }
 0x235   :  { %1022 = vst [vmem:[%s1983_s3] sm:$0xff] %v990_v11  ;;  %v959_v37 = vmul.f32 0.6931472, %v1366_v12  ;;  %v871_v45 = vpop.xlane.xlu0 %870 }
 0x236   :  { %v869_v38 = vpop.xlane.xlu1 %868 }
 0x237   :  { %v1006_v14 = vsub.f32 %v1729_v19, %v959_v37  ;;  %1375 = vlog2.f32 %v869_v38 }
 0x238   :  { %v1368_v15 = vpop.eup %1367  ;;  %1377 = vlog2.f32 %v871_v45 }
 0x239   :  { %v1370_v49 = vpop.eup %1369  ;;  %1038 = vst [vmem:[%s1983_s3 + $0x80] sm:$0xff] %v1006_v14  ;;  %v931_v10 = vmul.f32 0.6931472, %v1368_v15  ;;  %v903_v4 = vpop.xlane.xlu0 %902 }
 0x23a   :  { %v929_v50 = vmul.f32 0.6931472, %v1370_v49  ;;  %v901_v51 = vpop.xlane.xlu1 %900 }
 0x23b   :  { %v992_v28 = vsub.f32 %v1736_v27, %v931_v10  ;;  %1379 = vlog2.f32 %v901_v51 }
 0x23c   :  { %v991_v55 = vsub.f32 %v1739_v61, %v929_v50  ;;  %1381 = vlog2.f32 %v903_v4 }
 0x23d   :  { %v1372_v58 = vpop.eup %1371  ;;  %1024 = vst [vmem:[%s1983_s3 + $0x10] sm:$0xff] %v992_v28 }
 0x23e   :  { %v1374_v19 = vpop.eup %1373  ;;  %1023 = vst [vmem:[%s1983_s3 + $0x8] sm:$0xff] %v991_v55  ;;  %v961_v59 = vmul.f32 0.6931472, %v1372_v58  ;;  %v873_v7 = vpop.xlane.xlu1 %872 }
 0x23f   :  { %v875_v20 = vpop.xlane.xlu0 %874  ;;  %v963_v6 = vmul.f32 0.6931472, %v1374_v19  ;;  %1383 = vlog2.f32 %v873_v7 }
 0x240   :  { %v1007_v27 = vsub.f32 %v1733_v26, %v961_v59  ;;  %1385 = vlog2.f32 %v875_v20 }
 0x241   :  { %v1376_v61 = vpop.eup %1375  ;;  %v1008_v5 = vsub.f32 %v1748_v62, %v963_v6 }
 0x242   :  { %v1378_v9 = vpop.eup %1377  ;;  %1039 = vst [vmem:[%s1983_s3 + $0x88] sm:$0xff] %v1007_v27  ;;  %v933_v16 = vmul.f32 0.6931472, %v1376_v61  ;;  %v905_v17 = vpop.xlane.xlu1 %904 }
 0x243   :  { %v907_v18 = vpop.xlane.xlu0 %906  ;;  %1040 = vst [vmem:[%s1983_s3 + $0x90] sm:$0xff] %v1008_v5  ;;  %v935_v8 = vmul.f32 0.6931472, %v1378_v9  ;;  %1387 = vlog2.f32 %v905_v17 }
 0x244   :  { %v993_v26 = vsub.f32 %v1745_v36, %v933_v16  ;;  %1389 = vlog2.f32 %v907_v18 }
 0x245   :  { %v1380_v24 = vpop.eup %1379  ;;  %v994_v62 = vsub.f32 %v1756_v48, %v935_v8 }
 0x246   :  { %v1382_v21 = vpop.eup %1381  ;;  %1025 = vst [vmem:[%s1983_s3 + $0x18] sm:$0xff] %v993_v26  ;;  %v965_v25 = vmul.f32 0.6931472, %v1380_v24  ;;  %v877_v29 = vpop.xlane.xlu1 %876 }
 0x247   :  { %v879_v32 = vpop.xlane.xlu0 %878  ;;  %1026 = vst [vmem:[%s1983_s3 + $0x20] sm:$0xff] %v994_v62  ;;  %v967_v63 = vmul.f32 0.6931472, %v1382_v21  ;;  %1391 = vlog2.f32 %v877_v29 }
 0x248   :  { %v1009_v36 = vsub.f32 %v1753_v42, %v965_v25  ;;  %1393 = vlog2.f32 %v879_v32 }
 0x249   :  { %v1384_v41 = vpop.eup %1383  ;;  %v1010_v48 = vsub.f32 %v1764_v54, %v967_v63 }
 0x24a   :  { %v1386_v34 = vpop.eup %1385  ;;  %1041 = vst [vmem:[%s1983_s3 + $0x98] sm:$0xff] %v1009_v36  ;;  %v937_v11 = vmul.f32 0.6931472, %v1384_v41  ;;  %v909_v12 = vpop.xlane.xlu1 %908 }
 0x24b   :  { %v911_v37 = vpop.xlane.xlu0 %910  ;;  %1042 = vst [vmem:[%s1983_s3 + $0xa0] sm:$0xff] %v1010_v48  ;;  %v939_v38 = vmul.f32 0.6931472, %v1386_v34  ;;  %1395 = vlog2.f32 %v909_v12 }
 0x24c   :  { %v995_v42 = vsub.f32 %v1761_v53, %v937_v11  ;;  %1397 = vlog2.f32 %v911_v37 }
 0x24d   :  { %v1388_v45 = vpop.eup %1387  ;;  %v996_v54 = vsub.f32 %v1772_v30, %v939_v38 }
 0x24e   :  { %v1390_v14 = vpop.eup %1389  ;;  %1027 = vst [vmem:[%s1983_s3 + $0x28] sm:$0xff] %v995_v42  ;;  %v969_v15 = vmul.f32 0.6931472, %v1388_v45  ;;  %v881_v49 = vpop.xlane.xlu1 %880 }
 0x24f   :  { %v883_v10 = vpop.xlane.xlu0 %882  ;;  %1028 = vst [vmem:[%s1983_s3 + $0x30] sm:$0xff] %v996_v54  ;;  %v971_v50 = vmul.f32 0.6931472, %v1390_v14  ;;  %1399 = vlog2.f32 %v881_v49 }
 0x250   :  { %v1011_v53 = vsub.f32 %v1769_v1, %v969_v15  ;;  %1401 = vlog2.f32 %v883_v10 }
 0x251   :  { %v1392_v51 = vpop.eup %1391  ;;  %v1012_v30 = vsub.f32 %v1780_v39, %v971_v50 }
 0x252   :  { %v1394_v4 = vpop.eup %1393  ;;  %1043 = vst [vmem:[%s1983_s3 + $0xa8] sm:$0xff] %v1011_v53  ;;  %v941_v28 = vmul.f32 0.6931472, %v1392_v51  ;;  %v913_v55 = vpop.xlane.xlu1 %912 }
 0x253   :  { %v915_v58 = vpop.xlane.xlu0 %914  ;;  %1044 = vst [vmem:[%s1983_s3 + $0xb0] sm:$0xff] %v1012_v30  ;;  %v943_v19 = vmul.f32 0.6931472, %v1394_v4  ;;  %1403 = vlog2.f32 %v913_v55 }
 0x254   :  { %v997_v1 = vsub.f32 %v1777_v52, %v941_v28  ;;  %1405 = vlog2.f32 %v915_v58 }
 0x255   :  { %v1396_v59 = vpop.eup %1395  ;;  %v998_v39 = vsub.f32 %v1788_v46, %v943_v19 }
 0x256   :  { %v1398_v7 = vpop.eup %1397  ;;  %1029 = vst [vmem:[%s1983_s3 + $0x38] sm:$0xff] %v997_v1  ;;  %v973_v20 = vmul.f32 0.6931472, %v1396_v59  ;;  %v885_v6 = vpop.xlane.xlu1 %884 }
 0x257   :  { %v887_v27 = vpop.xlane.xlu0 %886  ;;  %1030 = vst [vmem:[%s1983_s3 + $0x40] sm:$0xff] %v998_v39  ;;  %v975_v61 = vmul.f32 0.6931472, %v1398_v7  ;;  %1407 = vlog2.f32 %v885_v6 }
 0x258   :  { %v1013_v52 = vsub.f32 %v1785_v33, %v973_v20  ;;  %1409 = vlog2.f32 %v887_v27 }
 0x259   :  { %v1400_v5 = vpop.eup %1399  ;;  %v1014_v46 = vsub.f32 %v1796_v56, %v975_v61 }
 0x25a   :  { %v1402_v9 = vpop.eup %1401  ;;  %1045 = vst [vmem:[%s1983_s3 + $0xb8] sm:$0xff] %v1013_v52  ;;  %v945_v16 = vmul.f32 0.6931472, %v1400_v5  ;;  %v917_v17 = vpop.xlane.xlu1 %916 }
 0x25b   :  { %v919_v18 = vpop.xlane.xlu0 %918  ;;  %1046 = vst [vmem:[%s1983_s3 + $0xc0] sm:$0xff] %v1014_v46  ;;  %v947_v8 = vmul.f32 0.6931472, %v1402_v9  ;;  %1411 = vlog2.f32 %v917_v17 }
 0x25c   :  { %v999_v33 = vsub.f32 %v1793_v40, %v945_v16  ;;  %1413 = vlog2.f32 %v919_v18 }
 0x25d   :  { %v1404_v26 = vpop.eup %1403  ;;  %v1000_v56 = vsub.f32 %v1804_v2, %v947_v8 }
 0x25e   :  { %v1406_v24 = vpop.eup %1405  ;;  %1031 = vst [vmem:[%s1983_s3 + $0x48] sm:$0xff] %v999_v33  ;;  %v977_v62 = vmul.f32 0.6931472, %v1404_v26  ;;  %v889_v21 = vpop.xlane.xlu1 %888 }
 0x25f   :  { %v891_v25 = vpop.xlane.xlu0 %890  ;;  %1032 = vst [vmem:[%s1983_s3 + $0x50] sm:$0xff] %v1000_v56  ;;  %v979_v29 = vmul.f32 0.6931472, %v1406_v24  ;;  %1415 = vlog2.f32 %v889_v21 }
 0x260   :  { %v1015_v40 = vsub.f32 %v1801_v23, %v977_v62  ;;  %1417 = vlog2.f32 %v891_v25 }
 0x261   :  { %v1408_v32 = vpop.eup %1407  ;;  %v1016_v2 = vsub.f32 %v1812_v13, %v979_v29 }
 0x262   :  { %v1410_v63 = vpop.eup %1409  ;;  %1047 = vst [vmem:[%s1983_s3 + $0xc8] sm:$0xff] %v1015_v40  ;;  %v949_v36 = vmul.f32 0.6931472, %v1408_v32  ;;  %v921_v41 = vpop.xlane.xlu1 %920 }
 0x263   :  { %v923_v48 = vpop.xlane.xlu0 %922  ;;  %1048 = vst [vmem:[%s1983_s3 + $0xd0] sm:$0xff] %v1016_v2  ;;  %v951_v34 = vmul.f32 0.6931472, %v1410_v63  ;;  %1419 = vlog2.f32 %v921_v41 }
 0x264   :  { %v1001_v23 = vsub.f32 %v1809_v31, %v949_v36  ;;  %1421 = vlog2.f32 %v923_v48 }
 0x265   :  { %v1412_v11 = vpop.eup %1411  ;;  %v1002_v13 = vsub.f32 %v1820_v22, %v951_v34 }
 0x266   :  { %v1414_v12 = vpop.eup %1413  ;;  %1033 = vst [vmem:[%s1983_s3 + $0x58] sm:$0xff] %v1001_v23  ;;  %v981_v37 = vmul.f32 0.6931472, %v1412_v11  ;;  %v893_v38 = vpop.xlane.xlu1 %892 }
 0x267   :  { %1034 = vst [vmem:[%s1983_s3 + $0x60] sm:$0xff] %v1002_v13  ;;  %v983_v42 = vmul.f32 0.6931472, %v1414_v12  ;;  %1423 = vlog2.f32 %v893_v38 }
 0x268   :  { %v1017_v45 = vsub.f32 %v1817_v44, %v981_v37 }
 0x269   :  { %v1416_v31 = vpop.eup %1415  ;;  %v1018_v54 = vsub.f32 %v1828_v35, %v983_v42 }
 0x26a   :  { %v1418_v14 = vpop.eup %1417  ;;  %1049 = vst [vmem:[%s1983_s3 + $0xd8] sm:$0xff] %v1017_v45  ;;  %v953_v22 = vmul.f32 0.6931472, %v1416_v31  ;;  %v925_v15 = vpop.xlane.xlu1 %924 }
 0x26b   :  { %1050 = vst [vmem:[%s1983_s3 + $0xe0] sm:$0xff] %v1018_v54  ;;  %v955_v49 = vmul.f32 0.6931472, %v1418_v14  ;;  %1425 = vlog2.f32 %v925_v15 }
 0x26c   :  { %v1003_v10 = vsub.f32 %v1825_v47, %v953_v22 }
 0x26d   :  { %v1420_v50 = vpop.eup %1419  ;;  %v1004_v44 = vsub.f32 %v1836_v43, %v955_v49 }
 0x26e   :  { %v1422_v53 = vpop.eup %1421  ;;  %1035 = vst [vmem:[%s1983_s3 + $0x68] sm:$0xff] %v1003_v10  ;;  %v985_v35 = vmul.f32 0.6931472, %v1420_v50 }
 0x26f   :  { %1036 = vst [vmem:[%s1983_s3 + $0x70] sm:$0xff] %v1004_v44  ;;  %v987_v51 = vmul.f32 0.6931472, %v1422_v53 }
 0x270   :  { %v1019_v30 = vsub.f32 %v1833_v0, %v985_v35 }
 0x271   :  { %v1424_v4 = vpop.eup %1423  ;;  %v1020_v28 = vsub.f32 %v1841_v57, %v987_v51 }
 0x272   :  { %1051 = vst [vmem:[%s1983_s3 + $0xe8] sm:$0xff] %v1019_v30  ;;  %v957_v47 = vmul.f32 0.6931472, %v1424_v4 }
 0x273   :  { %1052 = vst [vmem:[%s1983_s3 + $0xf0] sm:$0xff] %v1020_v28 }
 0x274   :  { %v1005_v43 = vsub.f32 %v1844_v3, %v957_v47 }
 0x275   :  { %v1426_v55 = vpop.eup %1425 }
 0x276   :  { %1037 = vst [vmem:[%s1983_s3 + $0x78] sm:$0xff] %v1005_v43  ;;  %v989_v0 = vmul.f32 0.6931472, %v1426_v55 }
 0x278   :  { %v1021_v58 = vsub.f32 %v1849_v60, %v989_v0 }
 0x27a   :  { %1053 = vst [vmem:[%s1983_s3 + $0xf8] sm:$0xff] %v1021_v58 }

// kernel: gcn_forward.4
= control target key start
LH: loop header
LB: loop body
LE: loop exit
PB: predicated region body
PF: predicated region fallthrough
CT: control target
= control target key end

     0   :  { %s1920_s1 = inlined_call_operand.vmem [shape: bf16[256,128], index: 1, kind: input, shape index: {}]   ;;  %s1921_s0 = inlined_call_operand.vmem [shape: bf16[256,256], index: 0, kind: input, shape index: {}]   ;;  %s1922_s3 = inlined_call_operand.vmem [shape: bf16[128,128], index: 3, kind: input, shape index: {}]   ;;  %s1923_s2 = inlined_call_operand.vmem [shape: f32[1,128], index: 2, kind: input, shape index: {}]   ;;  %s1924_s4 = inlined_call_operand.vmem [shape: bf16[256,128], index: 4, kind: output, shape index: {}]  }
   0x1   :  { %v1558_v0 = vld [vmem:[%s1920_s1 + $0x40] sm:$0xff]   ;;  %v1560_v2 = vld [vmem:[%s1920_s1 + $0x48] sm:$0xff]   ;;  %v1562_v4 = vld [vmem:[%s1920_s1 + $0x50] sm:$0xff]  }
   0x2   :  { %v1559_v1 = vld [vmem:[%s1920_s1] sm:$0xff]   ;;  %1358 = vmatprep.subr.bf16.mxu0 %v1558_v0  ;;  %1542 = vmatprep.subr.bf16.mxu1 %v1558_v0  ;;  %v1561_v3 = vld [vmem:[%s1920_s1 + $0x8] sm:$0xff]   ;;  %v1563_v5 = vld [vmem:[%s1920_s1 + $0x10] sm:$0xff]  }
   0x3   :  { %1359 = vmatpush3.bf16.msra.mxu0 %v1559_v1  ;;  %1550 = vmatpush3.bf16.msra.mxu1 %v1559_v1  ;;  %v1564_v6 = vld [vmem:[%s1920_s1 + $0x58] sm:$0xff]   ;;  %v1566_v8 = vld [vmem:[%s1920_s1 + $0x60] sm:$0xff]   ;;  %v1568_v10 = vld [vmem:[%s1920_s1 + $0x68] sm:$0xff]  }
   0x4   :  { %1360 = vmatprep.subr.bf16.mxu0 %v1560_v2  ;;  %1543 = vmatprep.subr.bf16.mxu1 %v1560_v2  ;;  %v1565_v7 = vld [vmem:[%s1920_s1 + $0x18] sm:$0xff]   ;;  %v1567_v9 = vld [vmem:[%s1920_s1 + $0x20] sm:$0xff]   ;;  %v1569_v12 = vld [vmem:[%s1920_s1 + $0x28] sm:$0xff]  }
   0x5   :  { %v1576_v11 = vld [vmem:[%s1921_s0 + $0x4] ss:$8 sps:$4 sm:$0xff]   ;;  %v1570_v13 = vld [vmem:[%s1920_s1 + $0x70] sm:$0xff]   ;;  %v1572_v15 = vld [vmem:[%s1920_s1 + $0x78] sm:$0xff]  }
   0x6   :  { %438 = vmatprep.mubr.bf16.mxu0 %v1576_v11  ;;  %v1571_v14 = vld [vmem:[%s1920_s1 + $0x30] sm:$0xff]   ;;  %v1573_v16 = vld [vmem:[%s1920_s1 + $0x38] sm:$0xff]   ;;  %v1574_v17 = vld [vmem:[%s1921_s0] ss:$8 sps:$4 sm:$0xff]  }
   0x7   :  { %1361 = vmatpush3.bf16.msra.mxu0 %v1561_v3  ;;  %1551 = vmatpush3.bf16.msra.mxu1 %v1561_v3  ;;  %v1606_v18 = vld [vmem:[%s1921_s0 + $0xc4] ss:$8 sps:$4 sm:$0xff]   ;;  %v1577_v19 = vld [vmem:[%s1921_s0 + $0x14] ss:$8 sps:$4 sm:$0xff]   ;;  %v1604_v20 = vld [vmem:[%s1921_s0 + $0xc0] ss:$8 sps:$4 sm:$0xff]  }
   0x8   :  { %1362 = vmatprep.subr.bf16.mxu0 %v1562_v4  ;;  %1544 = vmatprep.subr.bf16.mxu1 %v1562_v4  ;;  %v1610_v21 = vld [vmem:[%s1921_s0 + $0xd4] ss:$8 sps:$4 sm:$0xff]   ;;  %v1579_v22 = vld [vmem:[%s1921_s0 + $0x10] ss:$8 sps:$4 sm:$0xff]   ;;  %v1580_v23 = vld [vmem:[%s1921_s0 + $0x24] ss:$8 sps:$4 sm:$0xff]  }
   0x9   :  { %534 = vmatprep.mubr.bf16.mxu1 %v1606_v18  ;;  %v1612_v24 = vld [vmem:[%s1921_s0 + $0xd0] ss:$8 sps:$4 sm:$0xff]   ;;  %v1616_v25 = vld [vmem:[%s1921_s0 + $0xe4] ss:$8 sps:$4 sm:$0xff]   ;;  %v1582_v29 = vld [vmem:[%s1921_s0 + $0x20] ss:$8 sps:$4 sm:$0xff]  }
   0xa   :  { %v1622_v26 = vld [vmem:[%s1922_s3] sm:$0xff]   ;;  %v1623_v27 = vld [vmem:[%s1922_s3 + $0x8] sm:$0xff]   ;;  %v1624_v28 = vld [vmem:[%s1922_s3 + $0x10] sm:$0xff]  }
   0xb   :  { %1363 = vmatpush3.bf16.msra.mxu0 %v1563_v5  ;;  %1552 = vmatpush3.bf16.msra.mxu1 %v1563_v5  ;;  %v1583_v30 = vld [vmem:[%s1921_s0 + $0x34] ss:$8 sps:$4 sm:$0xff]   ;;  %v1618_v31 = vld [vmem:[%s1921_s0 + $0xe0] ss:$8 sps:$4 sm:$0xff]   ;;  %v1585_v33 = vld [vmem:[%s1921_s0 + $0x30] ss:$8 sps:$4 sm:$0xff]  }
   0xc   :  { %1364 = vmatprep.subr.bf16.mxu0 %v1564_v6  ;;  %1545 = vmatprep.subr.bf16.mxu1 %v1564_v6  ;;  %v1619_v32 = vld [vmem:[%s1921_s0 + $0xf4] ss:$8 sps:$4 sm:$0xff]   ;;  %v1586_v34 = vld [vmem:[%s1921_s0 + $0x44] ss:$8 sps:$4 sm:$0xff]   ;;  %v1621_v35 = vld [vmem:[%s1921_s0 + $0xf0] ss:$8 sps:$4 sm:$0xff]  }
   0xd   :  { %v1588_v36 = vld [vmem:[%s1921_s0 + $0x40] ss:$8 sps:$4 sm:$0xff]   ;;  %v1589_v37 = vld [vmem:[%s1921_s0 + $0x54] ss:$8 sps:$4 sm:$0xff]   ;;  %v1591_v38 = vld [vmem:[%s1921_s0 + $0x50] ss:$8 sps:$4 sm:$0xff]  }
   0xe   :  { %v1592_v39 = vld [vmem:[%s1921_s0 + $0x64] ss:$8 sps:$4 sm:$0xff]   ;;  %v1594_v40 = vld [vmem:[%s1921_s0 + $0x60] ss:$8 sps:$4 sm:$0xff]   ;;  %v1595_v41 = vld [vmem:[%s1921_s0 + $0x74] ss:$8 sps:$4 sm:$0xff]  }
   0xf   :  { %1365 = vmatpush3.bf16.msra.mxu0 %v1565_v7  ;;  %1553 = vmatpush3.bf16.msra.mxu1 %v1565_v7  ;;  %v1597_v42 = vld [vmem:[%s1921_s0 + $0x70] ss:$8 sps:$4 sm:$0xff]   ;;  %v1598_v43 = vld [vmem:[%s1921_s0 + $0x84] ss:$8 sps:$4 sm:$0xff]   ;;  %v1600_v44 = vld [vmem:[%s1921_s0 + $0x80] ss:$8 sps:$4 sm:$0xff]  }
  0x10   :  { %1366 = vmatprep.subr.bf16.mxu0 %v1566_v8  ;;  %1546 = vmatprep.subr.bf16.mxu1 %v1566_v8  ;;  %v1601_v45 = vld [vmem:[%s1921_s0 + $0x94] ss:$8 sps:$4 sm:$0xff]   ;;  %v1603_v46 = vld [vmem:[%s1921_s0 + $0x90] ss:$8 sps:$4 sm:$0xff]   ;;  %v1607_v47 = vld [vmem:[%s1921_s0 + $0xa4] ss:$8 sps:$4 sm:$0xff]  }
  0x11   :  { %v1609_v48 = vld [vmem:[%s1921_s0 + $0xa0] ss:$8 sps:$4 sm:$0xff]   ;;  %v1613_v49 = vld [vmem:[%s1921_s0 + $0xb4] ss:$8 sps:$4 sm:$0xff]   ;;  %v1615_v51 = vld [vmem:[%s1921_s0 + $0xb0] ss:$8 sps:$4 sm:$0xff]  }
  0x12   :  { %v1625_v50 = vld [vmem:[%s1922_s3 + $0x18] sm:$0xff]   ;;  %v1626_v52 = vld [vmem:[%s1922_s3 + $0x20] sm:$0xff]   ;;  %v1627_v53 = vld [vmem:[%s1922_s3 + $0x28] sm:$0xff]  }
  0x13   :  { %1367 = vmatpush3.bf16.msra.mxu0 %v1567_v9  ;;  %1554 = vmatpush3.bf16.msra.mxu1 %v1567_v9  ;;  %v1628_v54 = vld [vmem:[%s1922_s3 + $0x30] sm:$0xff]   ;;  %v1629_v55 = vld [vmem:[%s1922_s3 + $0x38] sm:$0xff]   ;;  %v1826_v58 = vld [vmem:[%s1923_s2] ss:$0 sm:$0xff] }
  0x14   :  { %1368 = vmatprep.subr.bf16.mxu0 %v1568_v10  ;;  %1547 = vmatprep.subr.bf16.mxu1 %v1568_v10 }
  0x17   :  { %1369 = vmatpush3.bf16.msra.mxu0 %v1569_v12  ;;  %1555 = vmatpush3.bf16.msra.mxu1 %v1569_v12 }
  0x18   :  { %1370 = vmatprep.subr.bf16.mxu0 %v1570_v13  ;;  %1548 = vmatprep.subr.bf16.mxu1 %v1570_v13 }
  0x1b   :  { %1371 = vmatpush3.bf16.msra.mxu0 %v1571_v14  ;;  %1556 = vmatpush3.bf16.msra.mxu1 %v1571_v14 }
  0x1c   :  { %1372 = vmatprep.subr.bf16.mxu0 %v1572_v15  ;;  %1549 = vmatprep.subr.bf16.mxu1 %v1572_v15 }
  0x1f   :  { %1373 = vmatpush3.bf16.msra.mxu0 %v1573_v16  ;;  %1557 = vmatpush3.bf16.msra.mxu1 %v1573_v16 }
  0x20   :  { %1494 = vmatprep.subr.bf16.mxu1 %v1622_v26 }
  0x22   :  { %439 = vmatmul.mubr.bf16.vlgmr.msra.gmra.mrb[0].mxu0 %v1574_v17  ;;  %535 = vmatmul.mubr.bf16.vlgmr.msra.gmra.mrb[0].mxu1 %v1604_v20 }
  0x23   :  { %446 = vmatprep.mubr.bf16.mxu0 %v1577_v19  ;;  %542 = vmatprep.mubr.bf16.mxu1 %v1610_v21 }
  0x24   :  { %1495 = vmatpush3.bf16.msra.mxu1 %v1622_v26 }
  0x25   :  { %1496 = vmatprep.subr.bf16.mxu1 %v1623_v27 }
  0x28   :  { %1497 = vmatpush3.bf16.msra.mxu1 %v1623_v27 }
  0x29   :  { %1498 = vmatprep.subr.bf16.mxu1 %v1624_v28 }
  0x2a   :  { %447 = vmatmul.mubr.bf16.gmra.mrb[4].mxu0 %v1579_v22  ;;  %543 = vmatmul.mubr.bf16.gmra.mrb[4].mxu1 %v1612_v24 }
  0x2b   :  { %454 = vmatprep.mubr.bf16.mxu0 %v1580_v23  ;;  %550 = vmatprep.mubr.bf16.mxu1 %v1616_v25 }
  0x2c   :  { %1499 = vmatpush3.bf16.msra.mxu1 %v1624_v28 }
  0x2d   :  { %1500 = vmatprep.subr.bf16.mxu1 %v1625_v50 }
  0x30   :  { %1501 = vmatpush3.bf16.msra.mxu1 %v1625_v50 }
  0x31   :  { %1502 = vmatprep.subr.bf16.mxu1 %v1626_v52 }
  0x32   :  { %455 = vmatmul.mubr.bf16.gmra.mrb[8].mxu0 %v1582_v29  ;;  %551 = vmatmul.mubr.bf16.gmra.mrb[8].mxu1 %v1618_v31 }
  0x33   :  { %462 = vmatprep.mubr.bf16.mxu0 %v1583_v30  ;;  %558 = vmatprep.mubr.bf16.mxu1 %v1619_v32 }
  0x34   :  { %1503 = vmatpush3.bf16.msra.mxu1 %v1626_v52 }
  0x35   :  { %1504 = vmatprep.subr.bf16.mxu1 %v1627_v53 }
  0x38   :  { %1505 = vmatpush3.bf16.msra.mxu1 %v1627_v53 }
  0x39   :  { %1506 = vmatprep.subr.bf16.mxu1 %v1628_v54 }
  0x3a   :  { %463 = vmatmul.mubr.bf16.gmra.mrb[12].mxu0 %v1585_v33  ;;  %559 = vmatmul.mubr.bf16.gmra.mrb[12].mxu1 %v1621_v35 }
  0x3b   :  { %470 = vmatprep.mubr.bf16.mxu0 %v1586_v34 }
  0x3c   :  { %1507 = vmatpush3.bf16.msra.mxu1 %v1628_v54 }
  0x3d   :  { %1508 = vmatprep.subr.bf16.mxu1 %v1629_v55 }
  0x40   :  { %1509 = vmatpush3.bf16.msra.mxu1 %v1629_v55 }
  0x42   :  { %471 = vmatmul.mubr.bf16.gmra.mrb[16].mxu0 %v1588_v36 }
  0x43   :  { %478 = vmatprep.mubr.bf16.mxu0 %v1589_v37 }
  0x4a   :  { %479 = vmatmul.mubr.bf16.gmra.mrb[20].mxu0 %v1591_v38 }
  0x4b   :  { %486 = vmatprep.mubr.bf16.mxu0 %v1592_v39 }
  0x52   :  { %487 = vmatmul.mubr.bf16.gmra.mrb[24].mxu0 %v1594_v40 }
  0x53   :  { %494 = vmatprep.mubr.bf16.mxu0 %v1595_v41 }
  0x5a   :  { %495 = vmatmul.mubr.bf16.gmra.mrb[28].mxu0 %v1597_v42 }
  0x5b   :  { %502 = vmatprep.mubr.bf16.mxu0 %v1598_v43 }
  0x62   :  { %503 = vmatmul.mubr.bf16.gmra.mrb[32].mxu0 %v1600_v44 }
  0x63   :  { %510 = vmatprep.mubr.bf16.mxu0 %v1601_v45 }
  0x6a   :  { %511 = vmatmul.mubr.bf16.gmra.mrb[36].mxu0 %v1603_v46 }
  0x6b   :  { %518 = vmatprep.mubr.bf16.mxu0 %v1607_v47 }
  0x72   :  { %519 = vmatmul.mubr.bf16.gmra.mrb[40].mxu0 %v1609_v48 }
  0x73   :  { %526 = vmatprep.mubr.bf16.mxu0 %v1613_v49 }
  0x7a   :  { %527 = vmatmul.mubr.bf16.gmra.mrb[44].mxu0 %v1615_v51 }
  0xf5   :  { %v1374_v56 = vpop.f32.mrb[0].mxu0  ;;  %v1446_v59 = vpop.f32.mrb[0].mxu1 }
  0xf6   :  { %v1375_v57 = vpop.f32.mrb[1].mxu0  ;;  %v1447_v62 = vpop.f32.mrb[1].mxu1 }
  0xf7   :  { %v1376_v60 = vadd.f32 %v1375_v57, %v1374_v56  ;;  %v1377_v61 = vpop.f32.mrb[2].mxu0  ;;  %v1448_v0 = vadd.f32 %v1447_v62, %v1446_v59  ;;  %v1449_v1 = vpop.f32.mrb[2].mxu1 }
  0xf8   :  { %v1378_v63 = vpop.f32.mrb[3].mxu0  ;;  %v1450_v4 = vpop.f32.mrb[3].mxu1 }
  0xf9   :  { %v673_v2 = vadd.f32 %v1376_v60, %v1826_v58  ;;  %v1379_v3 = vadd.f32 %v1378_v63, %v1377_v61  ;;  %v697_v5 = vadd.f32 %v1448_v0, %v1826_v58  ;;  %v1451_v6 = vadd.f32 %v1450_v4, %v1449_v1 }
  0xfb   :  { %v674_v7 = vadd.f32 %v1379_v3, %v1826_v58  ;;  %v729_v8 = vmax.f32 %v697_v5, 0.0  ;;  %v698_v9 = vadd.f32 %v1451_v6, %v1826_v58  ;;  %v705_v10 = vmax.f32 %v673_v2, 0.0 }
  0xfd   :  { %v706_v11 = vmax.f32 %v674_v7, 0.0  ;;  %v1380_v12 = vpop.f32.mrb[4].mxu0  ;;  %v730_v14 = vmax.f32 %v698_v9, 0.0  ;;  %v1452_v15 = vpop.f32.mrb[4].mxu1 }
  0xfe   :  { %v1381_v13 = vpop.f32.mrb[5].mxu0  ;;  %v1453_v19 = vpop.f32.mrb[5].mxu1 }
  0xff   :  { %v1382_v16 = vadd.f32 %v1381_v13, %v1380_v12  ;;  %v1383_v17 = vpop.f32.mrb[6].mxu0  ;;  %v737_v18 = vpack.c.bf16 %v706_v11, %v705_v10  ;;  %v1454_v21 = vadd.f32 %v1453_v19, %v1452_v15  ;;  %v1455_v22 = vpop.f32.mrb[6].mxu1  ;;  %v1832_v23 = vpack.c.bf16 %v730_v14, %v729_v8 }
 0x100   :  { %v1384_v20 = vpop.f32.mrb[7].mxu0  ;;  %v1456_v26 = vpop.f32.mrb[7].mxu1 }
 0x101   :  { %v675_v24 = vadd.f32 %v1382_v16, %v1826_v58  ;;  %v1385_v25 = vadd.f32 %v1384_v20, %v1383_v17  ;;  %1510 = vmatprep.mubr.bf16.mxu1 %v737_v18  ;;  %v699_v27 = vadd.f32 %v1454_v21, %v1826_v58  ;;  %v1457_v28 = vadd.f32 %v1456_v26, %v1455_v22 }
 0x103   :  { %v676_v29 = vadd.f32 %v1385_v25, %v1826_v58  ;;  %v731_v30 = vmax.f32 %v699_v27, 0.0  ;;  %v700_v31 = vadd.f32 %v1457_v28, %v1826_v58  ;;  %v707_v32 = vmax.f32 %v675_v24, 0.0 }
 0x105   :  { %v708_v33 = vmax.f32 %v676_v29, 0.0  ;;  %v1386_v34 = vpop.f32.mrb[8].mxu0  ;;  %v732_v36 = vmax.f32 %v700_v31, 0.0  ;;  %v1458_v37 = vpop.f32.mrb[8].mxu1 }
 0x106   :  { %v1387_v35 = vpop.f32.mrb[9].mxu0  ;;  %v1459_v41 = vpop.f32.mrb[9].mxu1 }
 0x107   :  { %v738_v38 = vpack.c.bf16 %v708_v33, %v707_v32  ;;  %v1388_v39 = vadd.f32 %v1387_v35, %v1386_v34  ;;  %v1389_v40 = vpop.f32.mrb[10].mxu0  ;;  %v1460_v43 = vadd.f32 %v1459_v41, %v1458_v37  ;;  %v1461_v44 = vpop.f32.mrb[10].mxu1  ;;  %v1838_v45 = vpack.c.bf16 %v732_v36, %v731_v30 }
 0x108   :  { %v1390_v42 = vpop.f32.mrb[11].mxu0  ;;  %v1462_v48 = vpop.f32.mrb[11].mxu1 }
 0x109   :  { %v677_v46 = vadd.f32 %v1388_v39, %v1826_v58  ;;  %v1391_v47 = vadd.f32 %v1390_v42, %v1389_v40  ;;  %1511 = vmatmul.mubr.bf16.vlgmr.msra.gmra.mrb[16].mxu1 %v738_v38  ;;  %v701_v49 = vadd.f32 %v1460_v43, %v1826_v58  ;;  %v1463_v50 = vadd.f32 %v1462_v48, %v1461_v44 }
 0x10b   :  { %v678_v51 = vadd.f32 %v1391_v47, %v1826_v58  ;;  %v733_v52 = vmax.f32 %v701_v49, 0.0  ;;  %v702_v53 = vadd.f32 %v1463_v50, %v1826_v58  ;;  %v709_v54 = vmax.f32 %v677_v46, 0.0 }
 0x10d   :  { %v710_v55 = vmax.f32 %v678_v51, 0.0  ;;  %v1392_v56 = vpop.f32.mrb[12].mxu0  ;;  %v734_v59 = vmax.f32 %v702_v53, 0.0  ;;  %v1464_v60 = vpop.f32.mrb[12].mxu1 }
 0x10e   :  { %v1393_v57 = vpop.f32.mrb[13].mxu0  ;;  %v1465_v0 = vpop.f32.mrb[13].mxu1 }
 0x10f   :  { %v1394_v61 = vadd.f32 %v1393_v57, %v1392_v56  ;;  %v1395_v62 = vpop.f32.mrb[14].mxu0  ;;  %v739_v63 = vpack.c.bf16 %v710_v55, %v709_v54  ;;  %v1466_v2 = vadd.f32 %v1465_v0, %v1464_v60  ;;  %v1467_v3 = vpop.f32.mrb[14].mxu1  ;;  %v1844_v4 = vpack.c.bf16 %v734_v59, %v733_v52 }
 0x110   :  { %v1396_v1 = vpop.f32.mrb[15].mxu0  ;;  %v1468_v7 = vpop.f32.mrb[15].mxu1 }
 0x111   :  { %v679_v5 = vadd.f32 %v1394_v61, %v1826_v58  ;;  %v1397_v6 = vadd.f32 %v1396_v1, %v1395_v62  ;;  %1514 = vmatprep.mubr.bf16.mxu1 %v739_v63  ;;  %v703_v8 = vadd.f32 %v1466_v2, %v1826_v58  ;;  %v1469_v9 = vadd.f32 %v1468_v7, %v1467_v3 }
 0x113   :  { %v680_v10 = vadd.f32 %v1397_v6, %v1826_v58  ;;  %v735_v11 = vmax.f32 %v703_v8, 0.0  ;;  %v704_v12 = vadd.f32 %v1469_v9, %v1826_v58  ;;  %v711_v13 = vmax.f32 %v679_v5, 0.0 }
 0x115   :  { %v712_v14 = vmax.f32 %v680_v10, 0.0  ;;  %v1398_v15 = vpop.f32.mrb[16].mxu0  ;;  %v736_v17 = vmax.f32 %v704_v12, 0.0 }
 0x116   :  { %v1399_v16 = vpop.f32.mrb[17].mxu0 }
 0x117   :  { %v1400_v18 = vadd.f32 %v1399_v16, %v1398_v15  ;;  %v1401_v19 = vpop.f32.mrb[18].mxu0  ;;  %v740_v20 = vpack.c.bf16 %v712_v14, %v711_v13  ;;  %v1850_v22 = vpack.c.bf16 %v736_v17, %v735_v11 }
 0x118   :  { %v1402_v21 = vpop.f32.mrb[19].mxu0 }
 0x119   :  { %v681_v24 = vadd.f32 %v1400_v18, %v1826_v58  ;;  %v1403_v25 = vadd.f32 %v1402_v21, %v1401_v19  ;;  %1515 = vmatmul.mubr.bf16.gmra.mrb[20].mxu1 %v740_v20 }
 0x11b   :  { %v682_v26 = vadd.f32 %v1403_v25, %v1826_v58  ;;  %v713_v27 = vmax.f32 %v681_v24, 0.0 }
 0x11d   :  { %v714_v28 = vmax.f32 %v682_v26, 0.0  ;;  %v1404_v29 = vpop.f32.mrb[20].mxu0 }
 0x11e   :  { %v1405_v30 = vpop.f32.mrb[21].mxu0 }
 0x11f   :  { %v1406_v31 = vadd.f32 %v1405_v30, %v1404_v29  ;;  %v1407_v32 = vpop.f32.mrb[22].mxu0  ;;  %v741_v33 = vpack.c.bf16 %v714_v28, %v713_v27 }
 0x120   :  { %v1408_v34 = vpop.f32.mrb[23].mxu0 }
 0x121   :  { %v683_v35 = vadd.f32 %v1406_v31, %v1826_v58  ;;  %v1409_v36 = vadd.f32 %v1408_v34, %v1407_v32  ;;  %1518 = vmatprep.mubr.bf16.mxu1 %v741_v33 }
 0x123   :  { %v684_v37 = vadd.f32 %v1409_v36, %v1826_v58  ;;  %v715_v38 = vmax.f32 %v683_v35, 0.0 }
 0x125   :  { %v716_v39 = vmax.f32 %v684_v37, 0.0  ;;  %v1410_v40 = vpop.f32.mrb[24].mxu0 }
 0x126   :  { %v1411_v41 = vpop.f32.mrb[25].mxu0 }
 0x127   :  { %v1412_v42 = vadd.f32 %v1411_v41, %v1410_v40  ;;  %v1413_v43 = vpop.f32.mrb[26].mxu0  ;;  %v742_v44 = vpack.c.bf16 %v716_v39, %v715_v38 }
 0x128   :  { %v1414_v46 = vpop.f32.mrb[27].mxu0 }
 0x129   :  { %v685_v47 = vadd.f32 %v1412_v42, %v1826_v58  ;;  %v1415_v48 = vadd.f32 %v1414_v46, %v1413_v43  ;;  %1519 = vmatmul.mubr.bf16.gmra.mrb[24].mxu1 %v742_v44 }
 0x12b   :  { %v686_v49 = vadd.f32 %v1415_v48, %v1826_v58  ;;  %v717_v50 = vmax.f32 %v685_v47, 0.0 }
 0x12d   :  { %v718_v51 = vmax.f32 %v686_v49, 0.0  ;;  %v1416_v52 = vpop.f32.mrb[28].mxu0 }
 0x12e   :  { %v1417_v53 = vpop.f32.mrb[29].mxu0 }
 0x12f   :  { %v1418_v54 = vadd.f32 %v1417_v53, %v1416_v52  ;;  %v1419_v55 = vpop.f32.mrb[30].mxu0  ;;  %v743_v56 = vpack.c.bf16 %v718_v51, %v717_v50 }
 0x130   :  { %v1420_v57 = vpop.f32.mrb[31].mxu0 }
 0x131   :  { %v687_v59 = vadd.f32 %v1418_v54, %v1826_v58  ;;  %v1421_v60 = vadd.f32 %v1420_v57, %v1419_v55  ;;  %1522 = vmatprep.mubr.bf16.mxu1 %v743_v56 }
 0x133   :  { %v688_v61 = vadd.f32 %v1421_v60, %v1826_v58  ;;  %v719_v62 = vmax.f32 %v687_v59, 0.0 }
 0x135   :  { %v720_v63 = vmax.f32 %v688_v61, 0.0  ;;  %v1422_v0 = vpop.f32.mrb[32].mxu0 }
 0x136   :  { %v1423_v1 = vpop.f32.mrb[33].mxu0 }
 0x137   :  { %v1424_v2 = vadd.f32 %v1423_v1, %v1422_v0  ;;  %v1425_v3 = vpop.f32.mrb[34].mxu0  ;;  %v744_v5 = vpack.c.bf16 %v720_v63, %v719_v62 }
 0x138   :  { %v1426_v6 = vpop.f32.mrb[35].mxu0 }
 0x139   :  { %v689_v7 = vadd.f32 %v1424_v2, %v1826_v58  ;;  %v1427_v8 = vadd.f32 %v1426_v6, %v1425_v3  ;;  %1523 = vmatmul.mubr.bf16.gmra.mrb[28].mxu1 %v744_v5 }
 0x13b   :  { %v690_v9 = vadd.f32 %v1427_v8, %v1826_v58  ;;  %v721_v10 = vmax.f32 %v689_v7, 0.0 }
 0x13d   :  { %v722_v11 = vmax.f32 %v690_v9, 0.0  ;;  %v1428_v12 = vpop.f32.mrb[36].mxu0 }
 0x13e   :  { %v1429_v13 = vpop.f32.mrb[37].mxu0 }
 0x13f   :  { %v1430_v14 = vadd.f32 %v1429_v13, %v1428_v12  ;;  %v1431_v15 = vpop.f32.mrb[38].mxu0  ;;  %v745_v16 = vpack.c.bf16 %v722_v11, %v721_v10 }
 0x140   :  { %v1432_v17 = vpop.f32.mrb[39].mxu0 }
 0x141   :  { %v691_v18 = vadd.f32 %v1430_v14, %v1826_v58  ;;  %v1433_v19 = vadd.f32 %v1432_v17, %v1431_v15  ;;  %1526 = vmatprep.mubr.bf16.mxu1 %v745_v16 }
 0x143   :  { %v692_v20 = vadd.f32 %v1433_v19, %v1826_v58  ;;  %v723_v21 = vmax.f32 %v691_v18, 0.0 }
 0x145   :  { %v724_v24 = vmax.f32 %v692_v20, 0.0  ;;  %v1434_v25 = vpop.f32.mrb[40].mxu0 }
 0x146   :  { %v1435_v26 = vpop.f32.mrb[41].mxu0 }
 0x147   :  { %v1436_v27 = vadd.f32 %v1435_v26, %v1434_v25  ;;  %v1437_v28 = vpop.f32.mrb[42].mxu0  ;;  %v746_v29 = vpack.c.bf16 %v724_v24, %v723_v21 }
 0x148   :  { %v1438_v30 = vpop.f32.mrb[43].mxu0 }
 0x149   :  { %v693_v31 = vadd.f32 %v1436_v27, %v1826_v58  ;;  %v1439_v32 = vadd.f32 %v1438_v30, %v1437_v28  ;;  %1527 = vmatmul.mubr.bf16.gmra.mrb[32].mxu1 %v746_v29 }
 0x14b   :  { %v694_v33 = vadd.f32 %v1439_v32, %v1826_v58  ;;  %v725_v34 = vmax.f32 %v693_v31, 0.0 }
 0x14d   :  { %v726_v35 = vmax.f32 %v694_v33, 0.0  ;;  %v1440_v36 = vpop.f32.mrb[44].mxu0 }
 0x14e   :  { %v1441_v37 = vpop.f32.mrb[45].mxu0 }
 0x14f   :  { %v1442_v38 = vadd.f32 %v1441_v37, %v1440_v36  ;;  %v1443_v39 = vpop.f32.mrb[46].mxu0  ;;  %v747_v40 = vpack.c.bf16 %v726_v35, %v725_v34 }
 0x150   :  { %v1444_v41 = vpop.f32.mrb[47].mxu0 }
 0x151   :  { %v695_v42 = vadd.f32 %v1442_v38, %v1826_v58  ;;  %v1445_v43 = vadd.f32 %v1444_v41, %v1443_v39  ;;  %1530 = vmatprep.mubr.bf16.mxu1 %v747_v40 }
 0x153   :  { %v696_v44 = vadd.f32 %v1445_v43, %v1826_v58  ;;  %v727_v46 = vmax.f32 %v695_v42, 0.0 }
 0x155   :  { %v728_v47 = vmax.f32 %v696_v44, 0.0 }
 0x157   :  { %v748_v48 = vpack.c.bf16 %v728_v47, %v727_v46 }
 0x159   :  { %1531 = vmatmul.mubr.bf16.gmra.mrb[36].mxu1 %v748_v48 }
 0x15a   :  { %1534 = vmatprep.mubr.bf16.mxu1 %v1832_v23 }
 0x161   :  { %1535 = vmatmul.mubr.bf16.gmra.mrb[40].mxu1 %v1838_v45 }
 0x162   :  { %1538 = vmatprep.mubr.bf16.mxu1 %v1844_v4 }
 0x169   :  { %1539 = vmatmul.mubr.bf16.gmra.mrb[44].mxu1 %v1850_v22 }
 0x1dc   :  { %v1512_v49 = vpop.f32.mrb[16].mxu1 }
 0x1dd   :  { %v851_v50 = vpop.f32.mrb[17].mxu1 }
 0x1de   :  { %v1513_v51 = vpop.f32.mrb[18].mxu1 }
 0x1df   :  { %v1271_v52 = vpack.c.bf16 %v1513_v51, %v1512_v49  ;;  %v854_v53 = vpop.f32.mrb[19].mxu1 }
 0x1e0   :  { %v1266_v54 = vpack.c.bf16 %v854_v53, %v851_v50 }
 0x1e1   :  { %1343 = vst [vmem:[%s1924_s4 + $0x8] sm:$0xff] %v1271_v52  }
 0x1e2   :  { %1267 = vst [vmem:[%s1924_s4] sm:$0xff] %v1266_v54  }
 0x1ec   :  { %v1516_v58 = vpop.f32.mrb[20].mxu1 }
 0x1ed   :  { %v867_v23 = vpop.f32.mrb[21].mxu1 }
 0x1ee   :  { %v1517_v45 = vpop.f32.mrb[22].mxu1 }
 0x1ef   :  { %v1281_v4 = vpack.c.bf16 %v1517_v45, %v1516_v58  ;;  %v870_v55 = vpop.f32.mrb[23].mxu1 }
 0x1f0   :  { %v1276_v22 = vpack.c.bf16 %v870_v55, %v867_v23 }
 0x1f1   :  { %1345 = vst [vmem:[%s1924_s4 + $0x18] sm:$0xff] %v1281_v4  }
 0x1f2   :  { %1344 = vst [vmem:[%s1924_s4 + $0x10] sm:$0xff] %v1276_v22  }
 0x1fc   :  { %v1520_v56 = vpop.f32.mrb[24].mxu1 }
 0x1fd   :  { %v883_v57 = vpop.f32.mrb[25].mxu1 }
 0x1fe   :  { %v1521_v59 = vpop.f32.mrb[26].mxu1 }
 0x1ff   :  { %v1291_v60 = vpack.c.bf16 %v1521_v59, %v1520_v56  ;;  %v886_v61 = vpop.f32.mrb[27].mxu1 }
 0x200   :  { %v1286_v62 = vpack.c.bf16 %v886_v61, %v883_v57 }
 0x201   :  { %1347 = vst [vmem:[%s1924_s4 + $0x28] sm:$0xff] %v1291_v60  }
 0x202   :  { %1346 = vst [vmem:[%s1924_s4 + $0x20] sm:$0xff] %v1286_v62  }
 0x20c   :  { %v1524_v63 = vpop.f32.mrb[28].mxu1 }
 0x20d   :  { %v899_v0 = vpop.f32.mrb[29].mxu1 }
 0x20e   :  { %v1525_v1 = vpop.f32.mrb[30].mxu1 }
 0x20f   :  { %v1301_v2 = vpack.c.bf16 %v1525_v1, %v1524_v63  ;;  %v902_v3 = vpop.f32.mrb[31].mxu1 }
 0x210   :  { %v1296_v5 = vpack.c.bf16 %v902_v3, %v899_v0 }
 0x211   :  { %1349 = vst [vmem:[%s1924_s4 + $0x38] sm:$0xff] %v1301_v2  }
 0x212   :  { %1348 = vst [vmem:[%s1924_s4 + $0x30] sm:$0xff] %v1296_v5  }
 0x21c   :  { %v1528_v6 = vpop.f32.mrb[32].mxu1 }
 0x21d   :  { %v915_v7 = vpop.f32.mrb[33].mxu1 }
 0x21e   :  { %v1529_v8 = vpop.f32.mrb[34].mxu1 }
 0x21f   :  { %v1311_v9 = vpack.c.bf16 %v1529_v8, %v1528_v6  ;;  %v918_v10 = vpop.f32.mrb[35].mxu1 }
 0x220   :  { %v1306_v11 = vpack.c.bf16 %v918_v10, %v915_v7 }
 0x221   :  { %1351 = vst [vmem:[%s1924_s4 + $0x48] sm:$0xff] %v1311_v9  }
 0x222   :  { %1350 = vst [vmem:[%s1924_s4 + $0x40] sm:$0xff] %v1306_v11  }
 0x22c   :  { %v1532_v12 = vpop.f32.mrb[36].mxu1 }
 0x22d   :  { %v931_v13 = vpop.f32.mrb[37].mxu1 }
 0x22e   :  { %v1533_v14 = vpop.f32.mrb[38].mxu1 }
 0x22f   :  { %v1321_v15 = vpack.c.bf16 %v1533_v14, %v1532_v12  ;;  %v934_v16 = vpop.f32.mrb[39].mxu1 }
 0x230   :  { %v1316_v17 = vpack.c.bf16 %v934_v16, %v931_v13 }
 0x231   :  { %1353 = vst [vmem:[%s1924_s4 + $0x58] sm:$0xff] %v1321_v15  }
 0x232   :  { %1352 = vst [vmem:[%s1924_s4 + $0x50] sm:$0xff] %v1316_v17  }
 0x234   :  { %v1536_v18 = vpop.f32.mrb[40].mxu1 }
 0x235   :  { %v947_v19 = vpop.f32.mrb[41].mxu1 }
 0x236   :  { %v1537_v20 = vpop.f32.mrb[42].mxu1 }
 0x237   :  { %v1331_v21 = vpack.c.bf16 %v1537_v20, %v1536_v18  ;;  %v950_v24 = vpop.f32.mrb[43].mxu1 }
 0x238   :  { %v1326_v25 = vpack.c.bf16 %v950_v24, %v947_v19 }
 0x239   :  { %1355 = vst [vmem:[%s1924_s4 + $0x68] sm:$0xff] %v1331_v21  }
 0x23a   :  { %1354 = vst [vmem:[%s1924_s4 + $0x60] sm:$0xff] %v1326_v25  }
 0x23c   :  { %v1540_v26 = vpop.f32.mrb[44].mxu1 }
 0x23d   :  { %v963_v27 = vpop.f32.mrb[45].mxu1 }
 0x23e   :  { %v1541_v28 = vpop.f32.mrb[46].mxu1 }
 0x23f   :  { %v1341_v29 = vpack.c.bf16 %v1541_v28, %v1540_v26  ;;  %v966_v30 = vpop.f32.mrb[47].mxu1 }
 0x240   :  { %v1336_v31 = vpack.c.bf16 %v966_v30, %v963_v27 }
 0x241   :  { %1357 = vst [vmem:[%s1924_s4 + $0x78] sm:$0xff] %v1341_v29  }
 0x242   :  { %1356 = vst [vmem:[%s1924_s4 + $0x70] sm:$0xff] %v1336_v31  }

</bundles_post_ra>
